<compile_context>
chip_gen: v7x
topology: tpu7x:2x2x1
jax: 0.10.0
libtpu: 0.0.40
codegen_flags: <defaults>
</compile_context>

<pallas_src>
import functools
import math

import numpy as np
import jax
import jax.numpy as jnp
from jax.experimental import pallas as pl
from jax.experimental.pallas import tpu as pltpu


def _vaedconv_kernel(x_ref, noise_ref, ma_ref, enc_w_ref, g_w_ref, g_b_ref,
                     dec_w_ref, head_w_ref, head_b_ref, out_ref, kl_ref,
                     *, L, D, tb, b_real):
    bf16 = jnp.bfloat16
    x = x_ref[...]                                            # (L, tb*C) f32

    # ---- RevIN 'norm' (affine=False, subtract_last=False, unbiased=False, eps=1e-5) ----
    mean_c = jnp.mean(x, axis=0, keepdims=True)               # (1, tb*C)
    var_c = jnp.mean((x - mean_c) ** 2, axis=0, keepdims=True)
    std_c = jnp.sqrt(var_c + 1e-5)
    xn = (x - mean_c) / std_c

    # ---- series_decomp: replicate-padded moving average as one MXU dot ----
    trend = jnp.dot(ma_ref[...], xn.astype(bf16),
                    preferred_element_type=jnp.float32)       # (L, tb*C)
    seasonal = xn - trend

    # ---- encoder: circular Conv1d(C->D, k=3) + eval BN.  The 3 taps are fused
    #      into one dot against a tap-stacked, batch-block-diagonal weight with
    #      the BN scale pre-folded into its columns; the BN shift is pre-folded
    #      into the GaussianNet bias (rank-1).  Circular shifts ride the XLU
    #      via pltpu.roll (y[l] = x[l - shift], matching jnp.roll /
    #      torch circular padding tap ordering). ----
    s3 = jnp.concatenate([pltpu.roll(seasonal, 1, 0), seasonal,
                          pltpu.roll(seasonal, L - 1, 0)], axis=1).astype(bf16)
    h = jnp.dot(s3, enc_w_ref[...], preferred_element_type=jnp.float32)    # (L, tb*D)

    # ---- GaussianNet: mu / logvar heads fused into one (2L, L) dot ----
    g = jnp.dot(g_w_ref[...], h.astype(bf16),
                preferred_element_type=jnp.float32) + g_b_ref[...]         # (2L, tb*D)
    mu = g[:L, :]
    logvar = g[L:, :]
    z = mu + noise_ref[...] * jnp.exp(0.5 * logvar)           # reparameterize (f32)

    # ---- KL, with zero-padded batch lanes masked out ----
    col = jax.lax.broadcasted_iota(jnp.int32, (1, tb * D), 1)
    live = ((pl.program_id(0) * (tb * D) + col) < b_real * D).astype(jnp.float32)
    kl_terms = (1.0 + logvar - mu * mu - jnp.exp(logvar)) * live
    kl = -0.5 * jnp.sum(jnp.sum(kl_terms, axis=1, keepdims=True),
                        axis=0, keepdims=True)                # (1, 1)

    # ---- decoder: circular Conv1d(D->C, k=3) + eval BN (scale folded into the
    #      weight, shift folded into the head bias) ----
    z3 = jnp.concatenate([pltpu.roll(z, 1, 0), z,
                          pltpu.roll(z, L - 1, 0)], axis=1).astype(bf16)
    y = jnp.dot(z3, dec_w_ref[...], preferred_element_type=jnp.float32)    # (L, tb*C)

    # ---- predict_head on both branches fused:
    #      head(y_bn) + head(trend) == head_w @ (y + trend) + [2*head_b + rank-1 BN shift] ----
    out = jnp.dot(head_w_ref[...], (y + trend).astype(bf16),
                  preferred_element_type=jnp.float32) + head_b_ref[...]    # (P, tb*C)

    # ---- RevIN 'denorm' ----
    out = out * std_c + mean_c
    out_ref[...] = out.astype(out_ref.dtype)

    # per-block KL written as a lane-dense (8, 128) slab (no masked scalar store)
    kl_ref[...] = jnp.broadcast_to(kl, kl_ref.shape).astype(kl_ref.dtype)


def moving_avg_matrix(L, ma):
    """A[l, m] such that (A @ x) == AvgPool1d(kernel=ma, stride=1) of replicate-padded x."""
    pad = (ma - 1) // 2
    A = np.zeros((L, L), dtype=np.float32)
    for l in range(L):
        for j in range(-pad, pad + 1):
            m = min(max(l + j, 0), L - 1)
            A[l, m] += 1.0 / ma
    return jnp.asarray(A)


def choose_tb(B, C, D):
    """Smallest batch-block size making both tb*C and tb*D multiples of 128 (lane-dense).

    tb is capped at this minimal unit (<= 128) so the O(tb^2) block-diagonal conv
    weights stay small and the MXU is not fed structural zeros; larger B simply
    yields more grid blocks (nb >= 2 => shards across v7x's two TensorCores)."""
    unit = math.lcm(128 // math.gcd(C, 128), 128 // math.gcd(D, 128))
    tb = unit
    b_pad = -(-B // tb) * tb
    nb = b_pad // tb
    return tb, b_pad, nb


def build_params(key, L, C, D, P):
    ks = jax.random.split(key, 8)

    def init(k, shape, scale):
        return jax.random.normal(k, shape, dtype=jnp.float32) * scale

    return dict(
        enc_w=init(ks[0], (D, C, 3), 0.2),     # torch Conv1d weight (out_ch, in_ch, k)
        dec_w=init(ks[1], (C, D, 3), 0.2),
        mu_w=init(ks[2], (L, L), 0.1),
        mu_b=init(ks[3], (L,), 0.05),
        lv_w=init(ks[4], (L, L), 0.1),
        lv_b=init(ks[5], (L,), 0.05),
        head_w=init(ks[6], (P, L), 0.1),
        head_b=init(ks[7], (P,), 0.05),
        # BatchNorm1d rows: [gamma, beta, running_mean, running_var] (torch defaults)
        enc_bn=jnp.stack([jnp.ones((D,)), jnp.zeros((D,)),
                          jnp.zeros((D,)), jnp.ones((D,))]).astype(jnp.float32),
        dec_bn=jnp.stack([jnp.ones((C,)), jnp.zeros((C,)),
                          jnp.zeros((C,)), jnp.ones((C,))]).astype(jnp.float32),
    )


def prepare_params(params, ma, L, C, D, P, tb):
    """One-time, parameter-only preprocessing (block-diag conv weights, BN folding,
    bias fusion, bf16 casts) — hoisted out of the per-call forward path."""
    f32, bf16 = jnp.float32, jnp.bfloat16
    eye_tb = jnp.eye(tb, dtype=f32)

    def bn_fold(bn):
        gamma, beta, rmean, rvar = bn[0], bn[1], bn[2], bn[3]
        scale = gamma / jnp.sqrt(rvar + 1e-5)
        shift = beta - rmean * scale
        return scale, shift

    enc_scale, enc_shift = bn_fold(params['enc_bn'])          # per d_model channel
    dec_scale, dec_shift = bn_fold(params['dec_bn'])          # per c_out channel

    def conv_blockdiag(w, out_scale):
        # torch Conv1d weight (out, in, 3) -> tap-stacked, batch-block-diagonal
        # (3*tb*in, tb*out) with the eval-BN scale folded into the output columns.
        wk = jnp.transpose(w, (2, 1, 0)).astype(f32) * out_scale[None, None, :]
        return jnp.concatenate([jnp.kron(eye_tb, wk[k]) for k in range(3)], axis=0)

    enc_wbd = conv_blockdiag(params['enc_w'], enc_scale).astype(bf16)   # (3*tb*C, tb*D)
    dec_wbd = conv_blockdiag(params['dec_w'], dec_scale).astype(bf16)   # (3*tb*D, tb*C)

    # Fused mu/logvar weight; encoder-BN shift folded into its bias as a rank-1 term.
    g_w = jnp.concatenate([params['mu_w'], params['lv_w']], axis=0)     # (2L, L)
    g_b = jnp.concatenate([params['mu_b'], params['lv_b']], axis=0)     # (2L,)
    enc_shift_t = jnp.tile(enc_shift, tb)                               # (tb*D,)
    g_bias = g_b[:, None] + jnp.sum(g_w, axis=1)[:, None] * enc_shift_t[None, :]

    # predict_head applied once to (decoder output + trend): bias doubled and the
    # decoder-BN shift folded in as a rank-1 term.
    head_w = params['head_w']                                           # (P, L)
    dec_shift_t = jnp.tile(dec_shift, tb)                               # (tb*C,)
    head_bias = (2.0 * params['head_b'])[:, None] \
        + jnp.sum(head_w, axis=1)[:, None] * dec_shift_t[None, :]

    return dict(
        tb=tb,
        ma=moving_avg_matrix(L, ma).astype(bf16),
        enc_w=enc_wbd,                       # bf16
        g_w=g_w.astype(bf16),
        g_b=g_bias.astype(f32),              # (2L, tb*D)
        dec_w=dec_wbd,                       # bf16
        head_w=head_w.astype(bf16),
        head_b=head_bias.astype(f32),        # (P, tb*C)
    )


def vaedconv_forward(batch_x, noise, prep):
    """Eval-mode forward; `prep` is the one-time output of prepare_params."""
    B, L, C = batch_x.shape
    D = noise.shape[-1]
    tb = prep['tb']
    P = prep['head_b'].shape[0]
    b_pad = -(-B // tb) * tb
    nb = b_pad // tb
    tbc, tbd = tb * C, tb * D
    f32 = jnp.float32
    assert prep['head_b'].shape == (P, tbc) and prep['g_b'].shape == (2 * L, tbd)

    # Layout plumbing: batch folded onto lanes (col = b*C + c) and zero-padded up
    # to a lane-dense multiple of tb.
    # TODO(synk): for production-sized B/L, fold this transpose/pad into the kernel
    # (3-D input blocks + in-VMEM relayout) to avoid the extra HBM passes.
    x2 = jnp.pad(jnp.transpose(batch_x, (1, 0, 2)).reshape(L, B * C),
                 ((0, 0), (0, (b_pad - B) * C)))
    noise2 = jnp.pad(jnp.transpose(noise, (1, 0, 2)).reshape(L, B * D),
                     ((0, 0), (0, (b_pad - B) * D)))

    kernel = functools.partial(_vaedconv_kernel, L=L, D=D, tb=tb, b_real=B)

    def run(single_buffer_consts):
        if single_buffer_consts:
            # Constant operands (index_map == (0,0) for every grid step): single
            # buffer them; double-buffering only doubles their VMEM footprint.
            def const(shape):
                return pl.BlockSpec(shape, lambda g: (0, 0),
                                    pipeline_mode=pl.Buffered(1))
        else:
            def const(shape):
                return pl.BlockSpec(shape, lambda g: (0, 0))

        return pl.pallas_call(
            kernel,
            grid=(nb,),
            in_specs=[
                pl.BlockSpec((L, tbc), lambda g: (0, g)),   # x (batch block on lanes)
                pl.BlockSpec((L, tbd), lambda g: (0, g)),   # reparameterization noise
                const((L, L)),                              # moving-average matrix (bf16)
                const((3 * tbc, tbd)),                      # encoder conv, tap-stacked block-diag, BN scale folded (bf16)
                const((2 * L, L)),                          # fused mu/logvar weight (bf16)
                const((2 * L, tbd)),                        # fused mu/logvar bias + enc-BN shift (f32)
                const((3 * tbd, tbc)),                      # decoder conv, tap-stacked block-diag, BN scale folded (bf16)
                const((P, L)),                              # predict_head weight (bf16)
                const((P, tbc)),                            # 2*head_b + dec-BN shift (f32)
            ],
            out_specs=[
                pl.BlockSpec((P, tbc), lambda g: (0, g)),   # lane-dense output block
                pl.BlockSpec((8, 128), lambda g: (g, 0)),   # per-block KL slab
            ],
            out_shape=[
                jax.ShapeDtypeStruct((P, b_pad * C), f32),
                jax.ShapeDtypeStruct((nb * 8, 128), f32),
            ],
            compiler_params=pltpu.CompilerParams(
                dimension_semantics=("parallel",)),         # batch blocks independent (v7x: 2 TCs)
        )(x2, noise2, prep['ma'], prep['enc_w'], prep['g_w'], prep['g_b'],
          prep['dec_w'], prep['head_w'], prep['head_b'])

    try:
        out2, kl_slab = run(single_buffer_consts=True)
        jax.block_until_ready((out2, kl_slab))
    except Exception:
        # pl.Buffered(1) on constants is a pure VMEM-footprint optimization; fall
        # back transparently if this JAX/Mosaic build rejects it.
        out2, kl_slab = run(single_buffer_consts=False)

    # ---- finalize (tiny wrapper-side math): drop batch padding, compute losses ----
    out = jnp.transpose(out2.reshape(P, b_pad, C)[:, :B, :], (1, 0, 2))   # (B, P, C)
    kl_total = jnp.sum(kl_slab.reshape(nb, 8, 128)[:, 0, 0])
    reconstruction_loss = jnp.mean((batch_x - out) ** 2)     # nn.MSELoss (mean)
    kl_loss = kl_total / B                                   # kl_loss / x.size(0)
    total_loss = reconstruction_loss + kl_loss
    return {
        'output': out,
        'batch_loss': total_loss,
        'reconstruction_loss': reconstruction_loss,
        'kl_loss': kl_loss,
    }


if __name__ == "__main__":
    # configs: enc_in=c_out=4, seq_len=16, d_model=8, moving_avg=5, ssl=True -> pred_len=seq_len
    B, L, C, D, ma = 2, 16, 4, 8, 5
    P = L

    key = jax.random.PRNGKey(0)
    kx, kn, kp = jax.random.split(key, 3)
    batch_x = jax.random.normal(kx, (B, L, C), dtype=jnp.float32)
    noise = jax.random.normal(kn, (B, L, D), dtype=jnp.float32)   # deterministic reparam noise
    params = build_params(kp, L, C, D, P)

    tb, _, _ = choose_tb(B, C, D)                 # tb=32 -> tb*C=128, tb*D=256 lane-dense
    prep = prepare_params(params, ma, L, C, D, P, tb)

    result = vaedconv_forward(batch_x, noise, prep)
    jax.block_until_ready(result)

    assert result['output'].shape == (B, P, C)
    assert bool(jnp.all(jnp.isfinite(result['output'])))
    assert bool(jnp.isfinite(result['batch_loss']))
    print("KERNEL_OK")
</pallas_src>

<mosaic_0001>
module attributes {stable_mosaic.version = 11 : i64} {
  func.func @_vaedconv_kernel(%arg0: i32, %arg1: memref<16x128xf32, #tpu.memory_space<vmem>>, %arg2: memref<16x256xf32, #tpu.memory_space<vmem>>, %arg3: memref<16x16xbf16, #tpu.memory_space<vmem>>, %arg4: memref<384x256xbf16, #tpu.memory_space<vmem>>, %arg5: memref<32x16xbf16, #tpu.memory_space<vmem>>, %arg6: memref<32x256xf32, #tpu.memory_space<vmem>>, %arg7: memref<768x128xbf16, #tpu.memory_space<vmem>>, %arg8: memref<16x16xbf16, #tpu.memory_space<vmem>>, %arg9: memref<16x128xf32, #tpu.memory_space<vmem>>, %arg10: memref<16x128xf32, #tpu.memory_space<vmem>>, %arg11: memref<8x128xf32, #tpu.memory_space<vmem>>) attributes {dimension_semantics = [#tpu.dimension_semantics<parallel>], iteration_bounds = array<i64: 1>, scalar_prefetch = 0 : i64, scratch_operands = 0 : i64, tpu.core_type = #tpu.core_type<tc>, window_params = [{transform_indices = @transform_0, window_bounds = array<i64: 16, 128>}, {transform_indices = @transform_1, window_bounds = array<i64: 16, 256>}, {pipeline_mode = #tpu.pipeline_mode<synchronous>, transform_indices = @transform_2, window_bounds = array<i64: 16, 16>}, {pipeline_mode = #tpu.pipeline_mode<synchronous>, transform_indices = @transform_3, window_bounds = array<i64: 384, 256>}, {pipeline_mode = #tpu.pipeline_mode<synchronous>, transform_indices = @transform_4, window_bounds = array<i64: 32, 16>}, {pipeline_mode = #tpu.pipeline_mode<synchronous>, transform_indices = @transform_5, window_bounds = array<i64: 32, 256>}, {pipeline_mode = #tpu.pipeline_mode<synchronous>, transform_indices = @transform_6, window_bounds = array<i64: 768, 128>}, {pipeline_mode = #tpu.pipeline_mode<synchronous>, transform_indices = @transform_7, window_bounds = array<i64: 16, 16>}, {pipeline_mode = #tpu.pipeline_mode<synchronous>, transform_indices = @transform_8, window_bounds = array<i64: 16, 128>}, {transform_indices = @transform_9, window_bounds = array<i64: 16, 128>}, {transform_indices = @transform_10, window_bounds = array<i64: 8, 128>}]} {
    %c0 = arith.constant 0 : index
    %c0_0 = arith.constant 0 : index
    %0 = vector.load %arg1[%c0, %c0_0] : memref<16x128xf32, #tpu.memory_space<vmem>>, vector<16x128xf32>
    %cst = arith.constant dense<0.000000e+00> : vector<128xf32>
    %1 = vector.multi_reduction <add>, %0, %cst [0] : vector<16x128xf32> to vector<128xf32>
    %2 = vector.shape_cast %1 : vector<128xf32> to vector<1x128xf32>
    %cst_1 = arith.constant 1.600000e+01 : f32
    %3 = vector.broadcast %cst_1 : f32 to vector<1x128xf32>
    %4 = arith.divf %2, %3 : vector<1x128xf32>
    %5 = vector.broadcast %4 : vector<1x128xf32> to vector<16x128xf32>
    %6 = arith.subf %0, %5 : vector<16x128xf32>
    %7 = arith.mulf %6, %6 : vector<16x128xf32>
    %cst_2 = arith.constant dense<0.000000e+00> : vector<128xf32>
    %8 = vector.multi_reduction <add>, %7, %cst_2 [0] : vector<16x128xf32> to vector<128xf32>
    %9 = vector.shape_cast %8 : vector<128xf32> to vector<1x128xf32>
    %cst_3 = arith.constant 1.600000e+01 : f32
    %10 = vector.broadcast %cst_3 : f32 to vector<1x128xf32>
    %11 = arith.divf %9, %10 : vector<1x128xf32>
    %cst_4 = arith.constant 9.99999974E-6 : f32
    %12 = vector.broadcast %cst_4 : f32 to vector<1x128xf32>
    %13 = arith.addf %11, %12 : vector<1x128xf32>
    %14 = math.sqrt %13 : vector<1x128xf32>
    %15 = vector.broadcast %4 : vector<1x128xf32> to vector<16x128xf32>
    %16 = arith.subf %0, %15 : vector<16x128xf32>
    %17 = vector.broadcast %14 : vector<1x128xf32> to vector<16x128xf32>
    %18 = arith.divf %16, %17 : vector<16x128xf32>
    %c0_5 = arith.constant 0 : index
    %c0_6 = arith.constant 0 : index
    %19 = vector.load %arg3[%c0_5, %c0_6] : memref<16x16xbf16, #tpu.memory_space<vmem>>, vector<16x16xbf16>
    %20 = arith.truncf %18 : vector<16x128xf32> to vector<16x128xbf16>
    %cst_7 = arith.constant dense<0.000000e+00> : vector<16x128xf32>
    %21 = tpu.matmul %19, %20, %cst_7 {dimension_numbers = #tpu.dot_dimension_numbers<[1], [0], [0], [1], [0, 0, 1, 1], [], []>} : vector<16x16xbf16>, vector<16x128xbf16>, vector<16x128xf32> -> vector<16x128xf32>
    %22 = arith.subf %18, %21 : vector<16x128xf32>
    %c1_i32 = arith.constant 1 : i32
    %23 = tpu.dynamic_rotate %22 by %c1_i32 dim 0 : vector<16x128xf32>, i32 -> vector<16x128xf32>
    %c15_i32 = arith.constant 15 : i32
    %24 = tpu.dynamic_rotate %22 by %c15_i32 dim 0 : vector<16x128xf32>, i32 -> vector<16x128xf32>
    %25 = tpu.concatenate %23, %22, %24 in 1 : vector<16x128xf32>, vector<16x128xf32>, vector<16x128xf32> -> vector<16x384xf32>
    %26 = arith.truncf %25 : vector<16x384xf32> to vector<16x384xbf16>
    %c0_8 = arith.constant 0 : index
    %c0_9 = arith.constant 0 : index
    %27 = vector.load %arg4[%c0_8, %c0_9] : memref<384x256xbf16, #tpu.memory_space<vmem>>, vector<384x256xbf16>
    %cst_10 = arith.constant dense<0.000000e+00> : vector<16x256xf32>
    %28 = tpu.matmul %26, %27, %cst_10 {dimension_numbers = #tpu.dot_dimension_numbers<[1], [0], [0], [1], [0, 0, 1, 1], [], []>} : vector<16x384xbf16>, vector<384x256xbf16>, vector<16x256xf32> -> vector<16x256xf32>
    %c0_11 = arith.constant 0 : index
    %c0_12 = arith.constant 0 : index
    %29 = vector.load %arg5[%c0_11, %c0_12] : memref<32x16xbf16, #tpu.memory_space<vmem>>, vector<32x16xbf16>
    %30 = arith.truncf %28 : vector<16x256xf32> to vector<16x256xbf16>
    %cst_13 = arith.constant dense<0.000000e+00> : vector<32x256xf32>
    %31 = tpu.matmul %29, %30, %cst_13 {dimension_numbers = #tpu.dot_dimension_numbers<[1], [0], [0], [1], [0, 0, 1, 1], [], []>} : vector<32x16xbf16>, vector<16x256xbf16>, vector<32x256xf32> -> vector<32x256xf32>
    %c0_14 = arith.constant 0 : index
    %c0_15 = arith.constant 0 : index
    %32 = vector.load %arg6[%c0_14, %c0_15] : memref<32x256xf32, #tpu.memory_space<vmem>>, vector<32x256xf32>
    %33 = arith.addf %31, %32 : vector<32x256xf32>
    %34 = vector.extract_strided_slice %33 {offsets = [0, 0], sizes = [16, 256], strides = [1, 1]} : vector<32x256xf32> to vector<16x256xf32>
    %35 = vector.extract_strided_slice %33 {offsets = [16, 0], sizes = [16, 256], strides = [1, 1]} : vector<32x256xf32> to vector<16x256xf32>
    %c0_16 = arith.constant 0 : index
    %c0_17 = arith.constant 0 : index
    %36 = vector.load %arg2[%c0_16, %c0_17] : memref<16x256xf32, #tpu.memory_space<vmem>>, vector<16x256xf32>
    %cst_18 = arith.constant 5.000000e-01 : f32
    %37 = vector.broadcast %cst_18 : f32 to vector<16x256xf32>
    %38 = arith.mulf %37, %35 : vector<16x256xf32>
    %39 = math.exp %38 : vector<16x256xf32>
    %40 = arith.mulf %36, %39 : vector<16x256xf32>
    %41 = arith.addf %34, %40 : vector<16x256xf32>
    %42 = tpu.iota {dimensions = array<i32: 1>} : vector<1x256xi32>
    %c256_i32 = arith.constant 256 : i32
    %43 = arith.muli %arg0, %c256_i32 : i32
    %44 = vector.broadcast %43 : i32 to vector<1x256xi32>
    %45 = arith.addi %44, %42 : vector<1x256xi32>
    %c16_i32 = arith.constant 16 : i32
    %46 = vector.broadcast %c16_i32 : i32 to vector<1x256xi32>
    %47 = arith.cmpi slt, %45, %46 : vector<1x256xi32>
    %48 = arith.extui %47 : vector<1x256xi1> to vector<1x256xi32>
    %49 = arith.sitofp %48 : vector<1x256xi32> to vector<1x256xf32>
    %cst_19 = arith.constant 1.000000e+00 : f32
    %50 = vector.broadcast %cst_19 : f32 to vector<16x256xf32>
    %51 = arith.addf %50, %35 : vector<16x256xf32>
    %52 = arith.mulf %34, %34 : vector<16x256xf32>
    %53 = arith.subf %51, %52 : vector<16x256xf32>
    %54 = math.exp %35 : vector<16x256xf32>
    %55 = arith.subf %53, %54 : vector<16x256xf32>
    %56 = vector.broadcast %49 : vector<1x256xf32> to vector<16x256xf32>
    %57 = arith.mulf %55, %56 : vector<16x256xf32>
    %cst_20 = arith.constant dense<0.000000e+00> : vector<16xf32>
    %58 = vector.multi_reduction <add>, %57, %cst_20 [1] : vector<16x256xf32> to vector<16xf32>
    %59 = vector.shape_cast %58 : vector<16xf32> to vector<16x1xf32>
    %cst_21 = arith.constant dense<0.000000e+00> : vector<1xf32>
    %60 = vector.multi_reduction <add>, %59, %cst_21 [0] : vector<16x1xf32> to vector<1xf32>
    %61 = vector.shape_cast %60 : vector<1xf32> to vector<1x1xf32>
    %cst_22 = arith.constant -5.000000e-01 : f32
    %62 = vector.broadcast %cst_22 : f32 to vector<1x1xf32>
    %63 = arith.mulf %62, %61 : vector<1x1xf32>
    %c1_i32_23 = arith.constant 1 : i32
    %64 = tpu.dynamic_rotate %41 by %c1_i32_23 dim 0 : vector<16x256xf32>, i32 -> vector<16x256xf32>
    %c15_i32_24 = arith.constant 15 : i32
    %65 = tpu.dynamic_rotate %41 by %c15_i32_24 dim 0 : vector<16x256xf32>, i32 -> vector<16x256xf32>
    %66 = tpu.concatenate %64, %41, %65 in 1 : vector<16x256xf32>, vector<16x256xf32>, vector<16x256xf32> -> vector<16x768xf32>
    %67 = arith.truncf %66 : vector<16x768xf32> to vector<16x768xbf16>
    %c0_25 = arith.constant 0 : index
    %c0_26 = arith.constant 0 : index
    %68 = vector.load %arg7[%c0_25, %c0_26] : memref<768x128xbf16, #tpu.memory_space<vmem>>, vector<768x128xbf16>
    %cst_27 = arith.constant dense<0.000000e+00> : vector<16x128xf32>
    %69 = tpu.matmul %67, %68, %cst_27 {dimension_numbers = #tpu.dot_dimension_numbers<[1], [0], [0], [1], [0, 0, 1, 1], [], []>} : vector<16x768xbf16>, vector<768x128xbf16>, vector<16x128xf32> -> vector<16x128xf32>
    %c0_28 = arith.constant 0 : index
    %c0_29 = arith.constant 0 : index
    %70 = vector.load %arg8[%c0_28, %c0_29] : memref<16x16xbf16, #tpu.memory_space<vmem>>, vector<16x16xbf16>
    %71 = arith.addf %69, %21 : vector<16x128xf32>
    %72 = arith.truncf %71 : vector<16x128xf32> to vector<16x128xbf16>
    %cst_30 = arith.constant dense<0.000000e+00> : vector<16x128xf32>
    %73 = tpu.matmul %70, %72, %cst_30 {dimension_numbers = #tpu.dot_dimension_numbers<[1], [0], [0], [1], [0, 0, 1, 1], [], []>} : vector<16x16xbf16>, vector<16x128xbf16>, vector<16x128xf32> -> vector<16x128xf32>
    %c0_31 = arith.constant 0 : index
    %c0_32 = arith.constant 0 : index
    %74 = vector.load %arg9[%c0_31, %c0_32] : memref<16x128xf32, #tpu.memory_space<vmem>>, vector<16x128xf32>
    %75 = arith.addf %73, %74 : vector<16x128xf32>
    %76 = vector.broadcast %14 : vector<1x128xf32> to vector<16x128xf32>
    %77 = arith.mulf %75, %76 : vector<16x128xf32>
    %78 = vector.broadcast %4 : vector<1x128xf32> to vector<16x128xf32>
    %79 = arith.addf %77, %78 : vector<16x128xf32>
    %c0_33 = arith.constant 0 : index
    %c0_34 = arith.constant 0 : index
    %80 = vector.load %arg10[%c0_33, %c0_34] : memref<16x128xf32, #tpu.memory_space<vmem>>, vector<16x128xf32>
    tpu.vector_store %arg10[%c0_33, %c0_34], %79 {strides = array<i32>} : memref<16x128xf32, #tpu.memory_space<vmem>>, vector<16x128xf32>,
    %81 = vector.shape_cast %63 : vector<1x1xf32> to vector<1x1xf32>
    %82 = vector.broadcast %81 : vector<1x1xf32> to vector<8x128xf32>
    %c0_35 = arith.constant 0 : index
    %c0_36 = arith.constant 0 : index
    %83 = vector.load %arg11[%c0_35, %c0_36] : memref<8x128xf32, #tpu.memory_space<vmem>>, vector<8x128xf32>
    tpu.vector_store %arg11[%c0_35, %c0_36], %82 {strides = array<i32>} : memref<8x128xf32, #tpu.memory_space<vmem>>, vector<8x128xf32>,
    return
  }
  func.func @transform_0(%arg0: i32) -> (i32, i32) {
    %c0_i32 = arith.constant 0 : i32
    %c0_i32_0 = arith.constant 0 : i32
    return %c0_i32, %arg0 : i32, i32
  }
  func.func @transform_1(%arg0: i32) -> (i32, i32) {
    %c0_i32 = arith.constant 0 : i32
    %c0_i32_0 = arith.constant 0 : i32
    return %c0_i32, %arg0 : i32, i32
  }
  func.func @transform_2(%arg0: i32) -> (i32, i32) {
    %c0_i32 = arith.constant 0 : i32
    %c0_i32_0 = arith.constant 0 : i32
    %c0_i32_1 = arith.constant 0 : i32
    return %c0_i32, %c0_i32_0 : i32, i32
  }
  func.func @transform_3(%arg0: i32) -> (i32, i32) {
    %c0_i32 = arith.constant 0 : i32
    %c0_i32_0 = arith.constant 0 : i32
    %c0_i32_1 = arith.constant 0 : i32
    return %c0_i32, %c0_i32_0 : i32, i32
  }
  func.func @transform_4(%arg0: i32) -> (i32, i32) {
    %c0_i32 = arith.constant 0 : i32
    %c0_i32_0 = arith.constant 0 : i32
    %c0_i32_1 = arith.constant 0 : i32
    return %c0_i32, %c0_i32_0 : i32, i32
  }
  func.func @transform_5(%arg0: i32) -> (i32, i32) {
    %c0_i32 = arith.constant 0 : i32
    %c0_i32_0 = arith.constant 0 : i32
    %c0_i32_1 = arith.constant 0 : i32
    return %c0_i32, %c0_i32_0 : i32, i32
  }
  func.func @transform_6(%arg0: i32) -> (i32, i32) {
    %c0_i32 = arith.constant 0 : i32
    %c0_i32_0 = arith.constant 0 : i32
    %c0_i32_1 = arith.constant 0 : i32
    return %c0_i32, %c0_i32_0 : i32, i32
  }
  func.func @transform_7(%arg0: i32) -> (i32, i32) {
    %c0_i32 = arith.constant 0 : i32
    %c0_i32_0 = arith.constant 0 : i32
    %c0_i32_1 = arith.constant 0 : i32
    return %c0_i32, %c0_i32_0 : i32, i32
  }
  func.func @transform_8(%arg0: i32) -> (i32, i32) {
    %c0_i32 = arith.constant 0 : i32
    %c0_i32_0 = arith.constant 0 : i32
    %c0_i32_1 = arith.constant 0 : i32
    return %c0_i32, %c0_i32_0 : i32, i32
  }
  func.func @transform_9(%arg0: i32) -> (i32, i32) {
    %c0_i32 = arith.constant 0 : i32
    %c0_i32_0 = arith.constant 0 : i32
    return %c0_i32, %arg0 : i32, i32
  }
  func.func @transform_10(%arg0: i32) -> (i32, i32) {
    %c0_i32 = arith.constant 0 : i32
    %c0_i32_0 = arith.constant 0 : i32
    return %arg0, %c0_i32 : i32, i32
  }
}

module attributes {stable_mosaic.version = 11 : i64} {
  func.func @_vaedconv_kernel(%arg0: i32, %arg1: memref<16x128xf32, #tpu.memory_space<vmem>>, %arg2: memref<16x256xf32, #tpu.memory_space<vmem>>, %arg3: memref<16x16xbf16, #tpu.memory_space<vmem>>, %arg4: memref<384x256xbf16, #tpu.memory_space<vmem>>, %arg5: memref<32x16xbf16, #tpu.memory_space<vmem>>, %arg6: memref<32x256xf32, #tpu.memory_space<vmem>>, %arg7: memref<768x128xbf16, #tpu.memory_space<vmem>>, %arg8: memref<16x16xbf16, #tpu.memory_space<vmem>>, %arg9: memref<16x128xf32, #tpu.memory_space<vmem>>, %arg10: memref<16x128xf32, #tpu.memory_space<vmem>>, %arg11: memref<8x128xf32, #tpu.memory_space<vmem>>) attributes {dimension_semantics = [#tpu.dimension_semantics<parallel>], iteration_bounds = array<i64: 1>, scalar_prefetch = 0 : i64, scratch_operands = 0 : i64, tpu.core_type = #tpu.core_type<tc>, window_params = [{transform_indices = @transform_0, window_bounds = array<i64: 16, 128>}, {transform_indices = @transform_1, window_bounds = array<i64: 16, 256>}, {pipeline_mode = #tpu.pipeline_mode<synchronous>, transform_indices = @transform_2, window_bounds = array<i64: 16, 16>}, {pipeline_mode = #tpu.pipeline_mode<synchronous>, transform_indices = @transform_3, window_bounds = array<i64: 384, 256>}, {pipeline_mode = #tpu.pipeline_mode<synchronous>, transform_indices = @transform_4, window_bounds = array<i64: 32, 16>}, {pipeline_mode = #tpu.pipeline_mode<synchronous>, transform_indices = @transform_5, window_bounds = array<i64: 32, 256>}, {pipeline_mode = #tpu.pipeline_mode<synchronous>, transform_indices = @transform_6, window_bounds = array<i64: 768, 128>}, {pipeline_mode = #tpu.pipeline_mode<synchronous>, transform_indices = @transform_7, window_bounds = array<i64: 16, 16>}, {pipeline_mode = #tpu.pipeline_mode<synchronous>, transform_indices = @transform_8, window_bounds = array<i64: 16, 128>}, {transform_indices = @transform_9, window_bounds = array<i64: 16, 128>}, {transform_indices = @transform_10, window_bounds = array<i64: 8, 128>}]} {
    %c0 = arith.constant 0 : index
    %c0_0 = arith.constant 0 : index
    %0 = vector.load %arg1[%c0, %c0_0] : memref<16x128xf32, #tpu.memory_space<vmem>>, vector<16x128xf32>
    %cst = arith.constant dense<0.000000e+00> : vector<128xf32>
    %1 = vector.multi_reduction <add>, %0, %cst [0] : vector<16x128xf32> to vector<128xf32>
    %2 = vector.shape_cast %1 : vector<128xf32> to vector<1x128xf32>
    %cst_1 = arith.constant 1.600000e+01 : f32
    %3 = vector.broadcast %cst_1 : f32 to vector<1x128xf32>
    %4 = arith.divf %2, %3 : vector<1x128xf32>
    %5 = vector.broadcast %4 : vector<1x128xf32> to vector<16x128xf32>
    %6 = arith.subf %0, %5 : vector<16x128xf32>
    %7 = arith.mulf %6, %6 : vector<16x128xf32>
    %cst_2 = arith.constant dense<0.000000e+00> : vector<128xf32>
    %8 = vector.multi_reduction <add>, %7, %cst_2 [0] : vector<16x128xf32> to vector<128xf32>
    %9 = vector.shape_cast %8 : vector<128xf32> to vector<1x128xf32>
    %cst_3 = arith.constant 1.600000e+01 : f32
    %10 = vector.broadcast %cst_3 : f32 to vector<1x128xf32>
    %11 = arith.divf %9, %10 : vector<1x128xf32>
    %cst_4 = arith.constant 9.99999974E-6 : f32
    %12 = vector.broadcast %cst_4 : f32 to vector<1x128xf32>
    %13 = arith.addf %11, %12 : vector<1x128xf32>
    %14 = math.sqrt %13 : vector<1x128xf32>
    %15 = vector.broadcast %4 : vector<1x128xf32> to vector<16x128xf32>
    %16 = arith.subf %0, %15 : vector<16x128xf32>
    %17 = vector.broadcast %14 : vector<1x128xf32> to vector<16x128xf32>
    %18 = arith.divf %16, %17 : vector<16x128xf32>
    %c0_5 = arith.constant 0 : index
    %c0_6 = arith.constant 0 : index
    %19 = vector.load %arg3[%c0_5, %c0_6] : memref<16x16xbf16, #tpu.memory_space<vmem>>, vector<16x16xbf16>
    %20 = arith.truncf %18 : vector<16x128xf32> to vector<16x128xbf16>
    %cst_7 = arith.constant dense<0.000000e+00> : vector<16x128xf32>
    %21 = tpu.matmul %19, %20, %cst_7 {dimension_numbers = #tpu.dot_dimension_numbers<[1], [0], [0], [1], [0, 0, 1, 1], [], []>} : vector<16x16xbf16>, vector<16x128xbf16>, vector<16x128xf32> -> vector<16x128xf32>
    %22 = arith.subf %18, %21 : vector<16x128xf32>
    %c1_i32 = arith.constant 1 : i32
    %23 = tpu.dynamic_rotate %22 by %c1_i32 dim 0 : vector<16x128xf32>, i32 -> vector<16x128xf32>
    %c15_i32 = arith.constant 15 : i32
    %24 = tpu.dynamic_rotate %22 by %c15_i32 dim 0 : vector<16x128xf32>, i32 -> vector<16x128xf32>
    %25 = tpu.concatenate %23, %22, %24 in 1 : vector<16x128xf32>, vector<16x128xf32>, vector<16x128xf32> -> vector<16x384xf32>
    %26 = arith.truncf %25 : vector<16x384xf32> to vector<16x384xbf16>
    %c0_8 = arith.constant 0 : index
    %c0_9 = arith.constant 0 : index
    %27 = vector.load %arg4[%c0_8, %c0_9] : memref<384x256xbf16, #tpu.memory_space<vmem>>, vector<384x256xbf16>
    %cst_10 = arith.constant dense<0.000000e+00> : vector<16x256xf32>
    %28 = tpu.matmul %26, %27, %cst_10 {dimension_numbers = #tpu.dot_dimension_numbers<[1], [0], [0], [1], [0, 0, 1, 1], [], []>} : vector<16x384xbf16>, vector<384x256xbf16>, vector<16x256xf32> -> vector<16x256xf32>
    %c0_11 = arith.constant 0 : index
    %c0_12 = arith.constant 0 : index
    %29 = vector.load %arg5[%c0_11, %c0_12] : memref<32x16xbf16, #tpu.memory_space<vmem>>, vector<32x16xbf16>
    %30 = arith.truncf %28 : vector<16x256xf32> to vector<16x256xbf16>
    %cst_13 = arith.constant dense<0.000000e+00> : vector<32x256xf32>
    %31 = tpu.matmul %29, %30, %cst_13 {dimension_numbers = #tpu.dot_dimension_numbers<[1], [0], [0], [1], [0, 0, 1, 1], [], []>} : vector<32x16xbf16>, vector<16x256xbf16>, vector<32x256xf32> -> vector<32x256xf32>
    %c0_14 = arith.constant 0 : index
    %c0_15 = arith.constant 0 : index
    %32 = vector.load %arg6[%c0_14, %c0_15] : memref<32x256xf32, #tpu.memory_space<vmem>>, vector<32x256xf32>
    %33 = arith.addf %31, %32 : vector<32x256xf32>
    %34 = vector.extract_strided_slice %33 {offsets = [0, 0], sizes = [16, 256], strides = [1, 1]} : vector<32x256xf32> to vector<16x256xf32>
    %35 = vector.extract_strided_slice %33 {offsets = [16, 0], sizes = [16, 256], strides = [1, 1]} : vector<32x256xf32> to vector<16x256xf32>
    %c0_16 = arith.constant 0 : index
    %c0_17 = arith.constant 0 : index
    %36 = vector.load %arg2[%c0_16, %c0_17] : memref<16x256xf32, #tpu.memory_space<vmem>>, vector<16x256xf32>
    %cst_18 = arith.constant 5.000000e-01 : f32
    %37 = vector.broadcast %cst_18 : f32 to vector<16x256xf32>
    %38 = arith.mulf %37, %35 : vector<16x256xf32>
    %39 = math.exp %38 : vector<16x256xf32>
    %40 = arith.mulf %36, %39 : vector<16x256xf32>
    %41 = arith.addf %34, %40 : vector<16x256xf32>
    %42 = tpu.iota {dimensions = array<i32: 1>} : vector<1x256xi32>
    %c256_i32 = arith.constant 256 : i32
    %43 = arith.muli %arg0, %c256_i32 : i32
    %44 = vector.broadcast %43 : i32 to vector<1x256xi32>
    %45 = arith.addi %44, %42 : vector<1x256xi32>
    %c16_i32 = arith.constant 16 : i32
    %46 = vector.broadcast %c16_i32 : i32 to vector<1x256xi32>
    %47 = arith.cmpi slt, %45, %46 : vector<1x256xi32>
    %48 = arith.extui %47 : vector<1x256xi1> to vector<1x256xi32>
    %49 = arith.sitofp %48 : vector<1x256xi32> to vector<1x256xf32>
    %cst_19 = arith.constant 1.000000e+00 : f32
    %50 = vector.broadcast %cst_19 : f32 to vector<16x256xf32>
    %51 = arith.addf %50, %35 : vector<16x256xf32>
    %52 = arith.mulf %34, %34 : vector<16x256xf32>
    %53 = arith.subf %51, %52 : vector<16x256xf32>
    %54 = math.exp %35 : vector<16x256xf32>
    %55 = arith.subf %53, %54 : vector<16x256xf32>
    %56 = vector.broadcast %49 : vector<1x256xf32> to vector<16x256xf32>
    %57 = arith.mulf %55, %56 : vector<16x256xf32>
    %cst_20 = arith.constant dense<0.000000e+00> : vector<16xf32>
    %58 = vector.multi_reduction <add>, %57, %cst_20 [1] : vector<16x256xf32> to vector<16xf32>
    %59 = vector.shape_cast %58 : vector<16xf32> to vector<16x1xf32>
    %cst_21 = arith.constant dense<0.000000e+00> : vector<1xf32>
    %60 = vector.multi_reduction <add>, %59, %cst_21 [0] : vector<16x1xf32> to vector<1xf32>
    %61 = vector.shape_cast %60 : vector<1xf32> to vector<1x1xf32>
    %cst_22 = arith.constant -5.000000e-01 : f32
    %62 = vector.broadcast %cst_22 : f32 to vector<1x1xf32>
    %63 = arith.mulf %62, %61 : vector<1x1xf32>
    %c1_i32_23 = arith.constant 1 : i32
    %64 = tpu.dynamic_rotate %41 by %c1_i32_23 dim 0 : vector<16x256xf32>, i32 -> vector<16x256xf32>
    %c15_i32_24 = arith.constant 15 : i32
    %65 = tpu.dynamic_rotate %41 by %c15_i32_24 dim 0 : vector<16x256xf32>, i32 -> vector<16x256xf32>
    %66 = tpu.concatenate %64, %41, %65 in 1 : vector<16x256xf32>, vector<16x256xf32>, vector<16x256xf32> -> vector<16x768xf32>
    %67 = arith.truncf %66 : vector<16x768xf32> to vector<16x768xbf16>
    %c0_25 = arith.constant 0 : index
    %c0_26 = arith.constant 0 : index
    %68 = vector.load %arg7[%c0_25, %c0_26] : memref<768x128xbf16, #tpu.memory_space<vmem>>, vector<768x128xbf16>
    %cst_27 = arith.constant dense<0.000000e+00> : vector<16x128xf32>
    %69 = tpu.matmul %67, %68, %cst_27 {dimension_numbers = #tpu.dot_dimension_numbers<[1], [0], [0], [1], [0, 0, 1, 1], [], []>} : vector<16x768xbf16>, vector<768x128xbf16>, vector<16x128xf32> -> vector<16x128xf32>
    %c0_28 = arith.constant 0 : index
    %c0_29 = arith.constant 0 : index
    %70 = vector.load %arg8[%c0_28, %c0_29] : memref<16x16xbf16, #tpu.memory_space<vmem>>, vector<16x16xbf16>
    %71 = arith.addf %69, %21 : vector<16x128xf32>
    %72 = arith.truncf %71 : vector<16x128xf32> to vector<16x128xbf16>
    %cst_30 = arith.constant dense<0.000000e+00> : vector<16x128xf32>
    %73 = tpu.matmul %70, %72, %cst_30 {dimension_numbers = #tpu.dot_dimension_numbers<[1], [0], [0], [1], [0, 0, 1, 1], [], []>} : vector<16x16xbf16>, vector<16x128xbf16>, vector<16x128xf32> -> vector<16x128xf32>
    %c0_31 = arith.constant 0 : index
    %c0_32 = arith.constant 0 : index
    %74 = vector.load %arg9[%c0_31, %c0_32] : memref<16x128xf32, #tpu.memory_space<vmem>>, vector<16x128xf32>
    %75 = arith.addf %73, %74 : vector<16x128xf32>
    %76 = vector.broadcast %14 : vector<1x128xf32> to vector<16x128xf32>
    %77 = arith.mulf %75, %76 : vector<16x128xf32>
    %78 = vector.broadcast %4 : vector<1x128xf32> to vector<16x128xf32>
    %79 = arith.addf %77, %78 : vector<16x128xf32>
    %c0_33 = arith.constant 0 : index
    %c0_34 = arith.constant 0 : index
    %80 = vector.load %arg10[%c0_33, %c0_34] : memref<16x128xf32, #tpu.memory_space<vmem>>, vector<16x128xf32>
    tpu.vector_store %arg10[%c0_33, %c0_34], %79 {strides = array<i32>} : memref<16x128xf32, #tpu.memory_space<vmem>>, vector<16x128xf32>,
    %81 = vector.shape_cast %63 : vector<1x1xf32> to vector<1x1xf32>
    %82 = vector.broadcast %81 : vector<1x1xf32> to vector<8x128xf32>
    %c0_35 = arith.constant 0 : index
    %c0_36 = arith.constant 0 : index
    %83 = vector.load %arg11[%c0_35, %c0_36] : memref<8x128xf32, #tpu.memory_space<vmem>>, vector<8x128xf32>
    tpu.vector_store %arg11[%c0_35, %c0_36], %82 {strides = array<i32>} : memref<8x128xf32, #tpu.memory_space<vmem>>, vector<8x128xf32>,
    return
  }
  func.func @transform_0(%arg0: i32) -> (i32, i32) {
    %c0_i32 = arith.constant 0 : i32
    %c0_i32_0 = arith.constant 0 : i32
    return %c0_i32, %arg0 : i32, i32
  }
  func.func @transform_1(%arg0: i32) -> (i32, i32) {
    %c0_i32 = arith.constant 0 : i32
    %c0_i32_0 = arith.constant 0 : i32
    return %c0_i32, %arg0 : i32, i32
  }
  func.func @transform_2(%arg0: i32) -> (i32, i32) {
    %c0_i32 = arith.constant 0 : i32
    %c0_i32_0 = arith.constant 0 : i32
    %c0_i32_1 = arith.constant 0 : i32
    return %c0_i32, %c0_i32_0 : i32, i32
  }
  func.func @transform_3(%arg0: i32) -> (i32, i32) {
    %c0_i32 = arith.constant 0 : i32
    %c0_i32_0 = arith.constant 0 : i32
    %c0_i32_1 = arith.constant 0 : i32
    return %c0_i32, %c0_i32_0 : i32, i32
  }
  func.func @transform_4(%arg0: i32) -> (i32, i32) {
    %c0_i32 = arith.constant 0 : i32
    %c0_i32_0 = arith.constant 0 : i32
    %c0_i32_1 = arith.constant 0 : i32
    return %c0_i32, %c0_i32_0 : i32, i32
  }
  func.func @transform_5(%arg0: i32) -> (i32, i32) {
    %c0_i32 = arith.constant 0 : i32
    %c0_i32_0 = arith.constant 0 : i32
    %c0_i32_1 = arith.constant 0 : i32
    return %c0_i32, %c0_i32_0 : i32, i32
  }
  func.func @transform_6(%arg0: i32) -> (i32, i32) {
    %c0_i32 = arith.constant 0 : i32
    %c0_i32_0 = arith.constant 0 : i32
    %c0_i32_1 = arith.constant 0 : i32
    return %c0_i32, %c0_i32_0 : i32, i32
  }
  func.func @transform_7(%arg0: i32) -> (i32, i32) {
    %c0_i32 = arith.constant 0 : i32
    %c0_i32_0 = arith.constant 0 : i32
    %c0_i32_1 = arith.constant 0 : i32
    return %c0_i32, %c0_i32_0 : i32, i32
  }
  func.func @transform_8(%arg0: i32) -> (i32, i32) {
    %c0_i32 = arith.constant 0 : i32
    %c0_i32_0 = arith.constant 0 : i32
    %c0_i32_1 = arith.constant 0 : i32
    return %c0_i32, %c0_i32_0 : i32, i32
  }
  func.func @transform_9(%arg0: i32) -> (i32, i32) {
    %c0_i32 = arith.constant 0 : i32
    %c0_i32_0 = arith.constant 0 : i32
    return %c0_i32, %arg0 : i32, i32
  }
  func.func @transform_10(%arg0: i32) -> (i32, i32) {
    %c0_i32 = arith.constant 0 : i32
    %c0_i32_0 = arith.constant 0 : i32
    return %arg0, %c0_i32 : i32, i32
  }
}

</mosaic_0001>

<bundles_post_ra>
// kernel: tpu_custom_call.1
= control target key start
LH: loop header
LB: loop body
LE: loop exit
PB: predicated region body
PF: predicated region fallthrough
CT: control target
= control target key end

     0   :  { %16 = vsyncpa [#allocation3], 0  ;;  %s2186_s0 = inlined_call_operand.vmem [shape: f32[16,128], index: 0, kind: input, shape index: {}]   ;;  %s2187_s1 = inlined_call_operand.hbm [shape: f32[16,256], index: 1, kind: input, shape index: {}]   ;;  %s2188_s2 = inlined_call_operand.hbm [shape: bf16[16,16], index: 2, kind: input, shape index: {}]   ;;  %s2189_s3 = inlined_call_operand.hbm [shape: bf16[384,256], index: 3, kind: input, shape index: {}]   ;;  %s2190_s4 = inlined_call_operand.vmem [shape: bf16[32,16], index: 4, kind: input, shape index: {}]   ;;  %s2191_s5 = inlined_call_operand.hbm [shape: f32[32,256], index: 5, kind: input, shape index: {}]   ;;  %s2192_s6 = inlined_call_operand.hbm [shape: bf16[768,128], index: 6, kind: input, shape index: {}]   ;;  %s2193_s7 = inlined_call_operand.vmem [shape: bf16[16,16], index: 7, kind: input, shape index: {}]   ;;  %s2194_s8 = inlined_call_operand.vmem [shape: f32[16,128], index: 8, kind: input, shape index: {}]   ;;  %s2195_s9 = inlined_call_operand.hbm [shape: f32[16,128], index: 9, kind: output, shape index: {0}]   ;;  %s2196_s10 = inlined_call_operand.hbm [shape: f32[8,128], index: 10, kind: output, shape index: {1}]  }
   0x1   :  { %17 = vsyncpa [#allocation6], 0 }
   0x2   :  { %18 = vsyncpa [#allocation9], 0 }
   0x3   :  { %19 = vsyncpa [#allocation4], 0 }
   0x4   :  { %20 = vsyncpa [#allocation13], 0  ;;  %s1883_s13 = smov [#allocation5]   ;;  %s1719_s17 = scalar_lea.hbm %s2188_s2, 128 }
   0x5   :  { %s40_s14 = sshll.u32 %s1883_s13, 4  ;;  %p1720_p0 = scmp.ne.s32.totalorder %s2188_s2, %s1719_s17  ;;  %s41_s14 = int_to_ptr.vmem [resolvable:$true] %s40_s14 }
   0x6   :  { %p1723_p1 = scmp.lt.u32.totalorder %s1719_s17, %s2188_s2 }
   0x8   :  { %p1725_p2 = pnand %p1723_p1, %p1720_p0 }
   0xa   :  { %1728 = shalt.err (!%p1725_p2)
}
   0xb   :  { %s1729_s22 = scalar_lea.vmem %s41_s14, 128  ;;  %p1734_p4 = scmp.lt.s32.totalorder %s41_s14, %s41_s14 }
   0xc   :  { %p1730_p3 = scmp.ne.s32.totalorder %s41_s14, %s1729_s22  ;;  %p1735_p5 = scmp.lt.s32.totalorder %s1729_s22, %s1729_s22 }
   0xe   :  { %p1736_p6 = por %p1735_p5, %p1734_p4 }
  0x10   :  { %p1737_p7 = pnand %p1736_p6, %p1730_p3 }
  0x12   :  { %1740 = shalt.err (!%p1737_p7)
}
  0x13   :  { %s1884_s23 = smov 64   ;;  %s1885_s24 = smov 4  }
  0x14   :  { %46 = dma.hbm_to_vmem [thread:$0]  %s2188_s2, 128, %s41_s14, [#allocation6], %s1884_s23, %s1884_s23, %s1885_s24  }
  0x15   :  { %s1886_s27 = smov [#allocation8]   ;;  %s1887_s29 = smov [#allocation2]  }
  0x16   :  { %s66_s28 = sshll.u32 %s1886_s27, 4  ;;  %s28_s30 = sshll.u32 %s1887_s29, 4  ;;  %s67_s28 = int_to_ptr.vmem [resolvable:$true] %s66_s28  ;;  %s29_s30 = int_to_ptr.vmem [resolvable:$true] %s28_s30 }
  0x17   :  { %s1741_s13 = scalar_lea.hbm %s2191_s5, 1024 }
  0x18   :  { %p1742_p8 = scmp.ne.s32.totalorder %s2191_s5, %s1741_s13  ;;  %p1745_p9 = scmp.lt.u32.totalorder %s1741_s13, %s2191_s5 }
  0x1a   :  { %p1747_p10 = pnand %p1745_p9, %p1742_p8 }
  0x1c   :  { %1750 = shalt.err (!%p1747_p10)
}
  0x1d   :  { %s1751_s2 = scalar_lea.vmem %s67_s28, 1024  ;;  %p1756_p12 = scmp.lt.s32.totalorder %s67_s28, %s67_s28 }
  0x1e   :  { %p1752_p11 = scmp.ne.s32.totalorder %s67_s28, %s1751_s2  ;;  %p1757_p13 = scmp.lt.s32.totalorder %s1751_s2, %s1751_s2 }
  0x20   :  { %p1758_p0 = por %p1757_p13, %p1756_p12 }
  0x22   :  { %p1759_p1 = pnand %p1758_p0, %p1752_p11 }
  0x24   :  { %1762 = shalt.err (!%p1759_p1)
}
  0x25   :  { %s1888_s14 = smov 256   ;;  %s1889_s19 = smov 16  }
  0x26   :  { %72 = dma.hbm_to_vmem [thread:$0]  %s2191_s5, 1024, %s67_s28, [#allocation9], %s1888_s14, %s1888_s14, %s1889_s19  }
  0x27   :  { %s1763_s26 = scalar_lea.hbm %s2187_s1, 512 }
  0x28   :  { %p1764_p2 = scmp.ne.s32.totalorder %s2187_s1, %s1763_s26  ;;  %p1767_p3 = scmp.lt.u32.totalorder %s1763_s26, %s2187_s1 }
  0x2a   :  { %p1769_p4 = pnand %p1767_p3, %p1764_p2 }
  0x2c   :  { %1772 = shalt.err (!%p1769_p4)
}
  0x2d   :  { %s1773_s13 = scalar_lea.vmem %s29_s30, 512  ;;  %p1778_p6 = scmp.lt.s32.totalorder %s29_s30, %s29_s30 }
  0x2e   :  { %p1774_p5 = scmp.ne.s32.totalorder %s29_s30, %s1773_s13  ;;  %p1779_p7 = scmp.lt.s32.totalorder %s1773_s13, %s1773_s13 }
  0x30   :  { %p1780_p8 = por %p1779_p7, %p1778_p6 }
  0x32   :  { %p1781_p9 = pnand %p1780_p8, %p1774_p5 }
  0x34   :  { %1784 = shalt.err (!%p1781_p9)
}
  0x35   :  { %34 = dma.hbm_to_vmem [thread:$0]  %s2187_s1, 512, %s29_s30, [#allocation3], %s1888_s14, %s1888_s14, %s1889_s19  }
  0x36   :  { %s1890_s15 = smov [#allocation7]   ;;  %s1785_s2 = scalar_lea.hbm %s2189_s3, 6144 }
  0x37   :  { %s52_s16 = sshll.u32 %s1890_s15, 4  ;;  %p1786_p10 = scmp.ne.s32.totalorder %s2189_s3, %s1785_s2  ;;  %s53_s16 = int_to_ptr.vmem [resolvable:$true] %s52_s16 }
  0x38   :  { %p1789_p11 = scmp.lt.u32.totalorder %s1785_s2, %s2189_s3 }
  0x3a   :  { %p1791_p12 = pnand %p1789_p11, %p1786_p10 }
  0x3c   :  { %1794 = shalt.err (!%p1791_p12)
}
  0x3d   :  { %s1795_s26 = scalar_lea.vmem %s53_s16, 6144  ;;  %p1800_p0 = scmp.lt.s32.totalorder %s53_s16, %s53_s16 }
  0x3e   :  { %p1796_p13 = scmp.ne.s32.totalorder %s53_s16, %s1795_s26  ;;  %p1801_p1 = scmp.lt.s32.totalorder %s1795_s26, %s1795_s26 }
  0x40   :  { %p1802_p2 = por %p1801_p1, %p1800_p0 }
  0x42   :  { %p1803_p3 = pnand %p1802_p2, %p1796_p13 }
  0x44   :  { %1806 = shalt.err (!%p1803_p3)
}
  0x45   :  { %s1891_s1 = smov 128   ;;  %s1892_s30 = smov 8  }
  0x46   :  { %58 = dma.hbm_to_vmem [thread:$0]  %s2189_s3, 6144, %s53_s16, [#allocation6], %s1891_s1, %s1891_s1, %s1892_s30  }
  0x47   :  { %s1893_s27 = smov [#allocation10]   ;;  %s1807_s13 = scalar_lea.hbm %s2192_s6, 6144 }
  0x48   :  { %s78_s29 = sshll.u32 %s1893_s27, 4  ;;  %p1808_p4 = scmp.ne.s32.totalorder %s2192_s6, %s1807_s13  ;;  %s79_s29 = int_to_ptr.vmem [resolvable:$true] %s78_s29 }
  0x49   :  { %p1811_p5 = scmp.lt.u32.totalorder %s1807_s13, %s2192_s6 }
  0x4b   :  { %p1813_p6 = pnand %p1811_p5, %p1808_p4 }
  0x4d   :  { %1816 = shalt.err (!%p1813_p6)
}
  0x4e   :  { %s1817_s18 = scalar_lea.vmem %s79_s29, 6144  ;;  %p1822_p8 = scmp.lt.s32.totalorder %s79_s29, %s79_s29 }
  0x4f   :  { %p1818_p7 = scmp.ne.s32.totalorder %s79_s29, %s1817_s18  ;;  %p1823_p9 = scmp.lt.s32.totalorder %s1817_s18, %s1817_s18 }
  0x51   :  { %p1824_p10 = por %p1823_p9, %p1822_p8 }
  0x53   :  { %p1825_p11 = pnand %p1824_p10, %p1818_p7 }
  0x55   :  { %1828 = shalt.err (!%p1825_p11)
}
  0x56   :  { %84 = dma.hbm_to_vmem [thread:$0]  %s2192_s6, 6144, %s79_s29, [#allocation9], %s1884_s23, %s1884_s23, %s1885_s24  }
  0x57   :  { %1873 = dma.done.wait [#allocation3], 512  }
  0x58   :  { %1874 = vsyncadd [#allocation3], 4294966784 }
  0x59   :  { %1875 = dma.done.wait [#allocation6], 6272  }
  0x5a   :  { %1876 = vsyncadd [#allocation6], 4294961024 }
  0x5b   :  { %1877 = dma.done.wait [#allocation9], 7168  }
  0x5c   :  { %1878 = vsyncadd [#allocation9], 4294960128  ;;  %v1894_v0 = vmov 0.0   ;;  %vm1895_vm0 = vmmov 0   ;;  %v105_v1 = vld [vmem:[%s2186_s0] sm:$0xff]  ;;  %v106_v2 = vld [vmem:[%s2186_s0 + $0x8] sm:$0xff] }
  0x5d   :  { %1543 = vmatprep.subr.bf16.mxu0 %v1894_v0  ;;  %1545 = vmatprep.mubr.msk.bf16.mxu0 %vm1895_vm0, %v1894_v0  ;;  %v107_v3 = vadd.f32 %v106_v2, %v105_v1  ;;  %v1576_v4 = vld [vmem:[#allocation7 + $0x4] ss:$8 sps:$4 sm:$0xff]   ;;  %v1578_v5 = vld [vmem:[#allocation7] ss:$8 sps:$4 sm:$0xff]   ;;  %v1579_v7 = vld [vmem:[#allocation7 + $0x14] ss:$8 sps:$4 sm:$0xff]  }
  0x5e   :  { %497 = vmatprep.subr.bf16.mxu1 %v1576_v4  ;;  %v1581_v9 = vld [vmem:[#allocation7 + $0x10] ss:$8 sps:$4 sm:$0xff]   ;;  %v1582_v10 = vld [vmem:[#allocation7 + $0x24] ss:$8 sps:$4 sm:$0xff]   ;;  %v1584_v13 = vld [vmem:[#allocation7 + $0x20] ss:$8 sps:$4 sm:$0xff]  }
  0x5f   :  { %v108_v6 = vrot.slane %v107_v3, 4  ;;  %498 = vmatpush1.bf16.msra.mxu1 %v1578_v5  ;;  %v1585_v14 = vld [vmem:[#allocation7 + $0x34] ss:$8 sps:$4 sm:$0xff]   ;;  %v1587_v17 = vld [vmem:[#allocation7 + $0x30] ss:$8 sps:$4 sm:$0xff]   ;;  %vm147_vm3 = vcmask 130048   ;;  %v196_v5 = vlaneseq }
  0x60   :  { %499 = vmatprep.subr.bf16.mxu1 %v1579_v7  ;;  %v1588_v18 = vld [vmem:[#allocation7 + $0x44] ss:$8 sps:$4 sm:$0xff]   ;;  %v1590_v22 = vld [vmem:[#allocation7 + $0x40] ss:$8 sps:$4 sm:$0xff]   ;;  %v1591_v23 = vld [vmem:[#allocation7 + $0x54] ss:$8 sps:$4 sm:$0xff]  }
  0x61   :  { %v109_v8 = vadd.f32 %v108_v6, %v107_v3  ;;  %v1593_v26 = vld [vmem:[#allocation7 + $0x50] ss:$8 sps:$4 sm:$0xff]   ;;  %v1594_v27 = vld [vmem:[#allocation7 + $0x64] ss:$8 sps:$4 sm:$0xff]   ;;  %v1596_v30 = vld [vmem:[#allocation7 + $0x60] ss:$8 sps:$4 sm:$0xff]  }
  0x62   :  { %v1597_v31 = vld [vmem:[#allocation7 + $0x74] ss:$8 sps:$4 sm:$0xff]   ;;  %v1599_v34 = vld [vmem:[#allocation7 + $0x70] ss:$8 sps:$4 sm:$0xff]   ;;  %v1600_v35 = vld [vmem:[#allocation7 + $0x84] ss:$8 sps:$4 sm:$0xff]  }
  0x63   :  { %v110_v11 = vrot.slane %v109_v8, 2  ;;  %500 = vmatpush1.bf16.msra.mxu1 %v1581_v9  ;;  %v1602_v38 = vld [vmem:[#allocation7 + $0x80] ss:$8 sps:$4 sm:$0xff]   ;;  %v1603_v39 = vld [vmem:[#allocation7 + $0x94] ss:$8 sps:$4 sm:$0xff]   ;;  %v1896_v4 = vmov 0  }
  0x64   :  { %501 = vmatprep.subr.bf16.mxu1 %v1582_v10  ;;  %v1605_v42 = vld [vmem:[#allocation7 + $0x90] ss:$8 sps:$4 sm:$0xff]   ;;  %v1606_v43 = vld [vmem:[#allocation7 + $0xa4] ss:$8 sps:$4 sm:$0xff]   ;;  %v1608_v46 = vld [vmem:[#allocation7 + $0xa0] ss:$8 sps:$4 sm:$0xff]  }
  0x65   :  { %v111_v12 = vadd.f32 %v110_v11, %v109_v8  ;;  %v1609_v47 = vld [vmem:[#allocation7 + $0xb4] ss:$8 sps:$4 sm:$0xff]   ;;  %v1611_v48 = vld [vmem:[#allocation7 + $0xb0] ss:$8 sps:$4 sm:$0xff]   ;;  %v1612_v49 = vld [vmem:[#allocation7 + $0xc4] ss:$8 sps:$4 sm:$0xff]  }
  0x66   :  { %v1614_v50 = vld [vmem:[#allocation7 + $0xc0] ss:$8 sps:$4 sm:$0xff]   ;;  %v1615_v51 = vld [vmem:[#allocation7 + $0xd4] ss:$8 sps:$4 sm:$0xff]   ;;  %v1617_v54 = vld [vmem:[#allocation7 + $0xd0] ss:$8 sps:$4 sm:$0xff]  }
  0x67   :  { %v112_v15 = vrot.slane %v111_v12, 1  ;;  %502 = vmatpush1.bf16.msra.mxu1 %v1584_v13  ;;  %v1575_v61 = vld [vmem:[#allocation5] sm:$0xff]   ;;  %v1618_v62 = vld [vmem:[#allocation7 + $0xe4] ss:$8 sps:$4 sm:$0xff]   ;;  %v1620_v63 = vld [vmem:[#allocation7 + $0xe0] ss:$8 sps:$4 sm:$0xff]  }
  0x68   :  { %503 = vmatprep.subr.bf16.mxu1 %v1585_v14  ;;  %v1626_v3 = vld [vmem:[#allocation7 + $0x104] ss:$8 sps:$4 sm:$0xff]   ;;  %v2054_v7 = vshrl.u32 %v196_v5, 7  ;;  %s1897_s26 = smov [#allocation12]  }
  0x69   :  { %v113_v16 = vadd.f32 %v112_v15, %v111_v12  ;;  %s1353_s14 = sshll.u32 %s1897_s26, 4  ;;  %s1354_s14 = int_to_ptr.vmem [resolvable:$true] %s1353_s14 }
  0x6a   :  { %vm198_vm4 = vcmp.lt.s32.totalorder %v2054_v7, 1  ;;  %vm203_vm5 = vcmp.lt.s32.totalorder %v2054_v7, 7  ;;  %v1674_v7 = vld [vmem:[#allocation10 + $0xe0] sm:$0xff]   ;;  %s1829_s19 = scalar_lea.vmem %s1354_s14, 128  ;;  %p1834_p13 = scmp.lt.s32.totalorder %s1354_s14, %s1354_s14 }
  0x6b   :  { %v2032_v19 = vmul.f32 0.0625, %v113_v16  ;;  %504 = vmatpush1.bf16.msra.mxu1 %v1587_v17  ;;  %p1830_p12 = scmp.ne.s32.totalorder %s1354_s14, %s1829_s19  ;;  %p1835_p0 = scmp.lt.s32.totalorder %s1829_s19, %s1829_s19 }
  0x6c   :  { %505 = vmatprep.subr.bf16.mxu1 %v1588_v18  ;;  %v1624_v18 = vld [vmem:[#allocation7 + $0x100] ss:$8 sps:$4 sm:$0xff]  }
  0x6d   :  { %v2035_v20 = vsub.f32 %v105_v1, %v2032_v19  ;;  %v2038_v21 = vsub.f32 %v106_v2, %v2032_v19  ;;  %v1621_v1 = vld [vmem:[#allocation7 + $0xf4] ss:$8 sps:$4 sm:$0xff]   ;;  %v1623_v2 = vld [vmem:[#allocation7 + $0xf0] ss:$8 sps:$4 sm:$0xff]   ;;  %p1836_p1 = por %p1835_p0, %p1834_p13 }
  0x6f   :  { %v118_v24 = vmul.f32 %v2035_v20, %v2035_v20  ;;  %v119_v25 = vmul.f32 %v2038_v21, %v2038_v21  ;;  %506 = vmatpush1.bf16.msra.mxu1 %v1590_v22  ;;  %p1837_p2 = pnand %p1836_p1, %p1830_p12 }
  0x70   :  { %507 = vmatprep.subr.bf16.mxu1 %v1591_v23 }
  0x71   :  { %v120_v28 = vadd.f32 %v119_v25, %v118_v24  ;;  %v1629_v25 = vld [vmem:[#allocation7 + $0x114] ss:$8 sps:$4 sm:$0xff]  }
  0x73   :  { %v121_v29 = vrot.slane %v120_v28, 4  ;;  %508 = vmatpush1.bf16.msra.mxu1 %v1593_v26 }
  0x74   :  { %509 = vmatprep.subr.bf16.mxu1 %v1594_v27  ;;  %v1627_v27 = vld [vmem:[#allocation7 + $0x110] ss:$8 sps:$4 sm:$0xff]  }
  0x75   :  { %v122_v32 = vadd.f32 %v121_v29, %v120_v28  ;;  %v1632_v28 = vld [vmem:[#allocation7 + $0x124] ss:$8 sps:$4 sm:$0xff]   ;;  %v1630_v29 = vld [vmem:[#allocation7 + $0x120] ss:$8 sps:$4 sm:$0xff]  }
  0x77   :  { %v123_v33 = vrot.slane %v122_v32, 2  ;;  %510 = vmatpush1.bf16.msra.mxu1 %v1596_v30  ;;  %v1635_v30 = vld [vmem:[#allocation7 + $0x134] ss:$8 sps:$4 sm:$0xff]  }
  0x78   :  { %511 = vmatprep.subr.bf16.mxu1 %v1597_v31  ;;  %v1633_v31 = vld [vmem:[#allocation7 + $0x130] ss:$8 sps:$4 sm:$0xff]  }
  0x79   :  { %v124_v36 = vadd.f32 %v123_v33, %v122_v32  ;;  %v1638_v32 = vld [vmem:[#allocation7 + $0x144] ss:$8 sps:$4 sm:$0xff]   ;;  %v1636_v33 = vld [vmem:[#allocation7 + $0x140] ss:$8 sps:$4 sm:$0xff]  }
  0x7b   :  { %v125_v37 = vrot.slane %v124_v36, 1  ;;  %512 = vmatpush1.bf16.msra.mxu1 %v1599_v34  ;;  %v1641_v34 = vld [vmem:[#allocation7 + $0x154] ss:$8 sps:$4 sm:$0xff]  }
  0x7c   :  { %513 = vmatprep.subr.bf16.mxu1 %v1600_v35  ;;  %v1639_v35 = vld [vmem:[#allocation7 + $0x150] ss:$8 sps:$4 sm:$0xff]  }
  0x7d   :  { %v126_v40 = vadd.f32 %v125_v37, %v124_v36  ;;  %v1644_v36 = vld [vmem:[#allocation7 + $0x164] ss:$8 sps:$4 sm:$0xff]   ;;  %v1642_v37 = vld [vmem:[#allocation7 + $0x160] ss:$8 sps:$4 sm:$0xff]  }
  0x7f   :  { %v127_v41 = vmul.f32 0.0625, %v126_v40  ;;  %514 = vmatpush1.bf16.msra.mxu1 %v1602_v38  ;;  %v1647_v38 = vld [vmem:[#allocation7 + $0x174] ss:$8 sps:$4 sm:$0xff]  }
  0x80   :  { %515 = vmatprep.subr.bf16.mxu1 %v1603_v39  ;;  %v1645_v39 = vld [vmem:[#allocation7 + $0x170] ss:$8 sps:$4 sm:$0xff]  }
  0x81   :  { %v128_v44 = vadd.f32 1e-05, %v127_v41 }
  0x83   :  { %1699 = vrsqrt.f32 %v128_v44  ;;  %v134_v45 = vand.u32 2147483648, %v128_v44  ;;  %vm131_vm1 = vcmp.eq.f32.partialorder %v128_v44, inf  ;;  %516 = vmatpush1.bf16.msra.mxu1 %v1605_v42  ;;  %vm133_vm2 = vcmp.eq.f32.partialorder %v128_v44, 0.0 }
  0x84   :  { %517 = vmatprep.subr.bf16.mxu1 %v1606_v43 }
  0x87   :  { %518 = vmatpush1.bf16.msra.mxu1 %v1608_v46  ;;  %v1648_v46 = vld [vmem:[%s2190_s4] sm:$0xff]  }
  0x88   :  { %519 = vmatprep.subr.bf16.mxu1 %v1609_v47  ;;  %v1649_v47 = vld [vmem:[%s2190_s4 + $0x8] sm:$0xff]  }
  0x8b   :  { %520 = vmatpush1.bf16.msra.mxu1 %v1611_v48  ;;  %v1650_v48 = vld [vmem:[#allocation10 + $0x40] sm:$0xff]  }
  0x8c   :  { %521 = vmatprep.subr.bf16.mxu1 %v1612_v49  ;;  %v1651_v49 = vld [vmem:[#allocation10] sm:$0xff]  }
  0x8d   :  { %v1700_v52 = vpop.eup %1699 }
  0x8e   :  { %v130_v53 = vmul.f32 %v1700_v52, %v128_v44  ;;  %v1654_v52 = vld [vmem:[#allocation10 + $0x50] sm:$0xff]  }
  0x8f   :  { %522 = vmatpush1.bf16.msra.mxu1 %v1614_v50  ;;  %v1652_v50 = vld [vmem:[#allocation10 + $0x48] sm:$0xff]  }
  0x90   :  { %v132_v55 = vsel %vm131_vm1, %v128_v44, %v130_v53  ;;  %523 = vmatprep.subr.bf16.mxu1 %v1615_v51  ;;  %v1653_v51 = vld [vmem:[#allocation10 + $0x8] sm:$0xff]   ;;  %v1655_v53 = vld [vmem:[#allocation10 + $0x10] sm:$0xff]  }
  0x91   :  { %v2044_v56 = vsel %vm133_vm2, %v134_v45, %v132_v55  ;;  %v1657_v55 = vld [vmem:[#allocation10 + $0x18] sm:$0xff]  }
  0x92   :  { %1701 = vrcp.f32 %v2044_v56 }
  0x93   :  { %524 = vmatpush1.bf16.msra.mxu1 %v1617_v54  ;;  %v1656_v54 = vld [vmem:[#allocation10 + $0x58] sm:$0xff]  }
  0x94   :  { %525 = vmatprep.subr.bf16.mxu1 %v1618_v62  ;;  %v1663_v62 = vld [vmem:[#allocation10 + $0x30] sm:$0xff]  }
  0x97   :  { %526 = vmatpush1.bf16.msra.mxu1 %v1620_v63  ;;  %v1664_v63 = vld [vmem:[#allocation10 + $0x78] sm:$0xff]  }
  0x98   :  { %527 = vmatprep.subr.bf16.mxu1 %v1621_v1  ;;  %v1665_v1 = vld [vmem:[#allocation10 + $0x38] sm:$0xff]  }
  0x9b   :  { %528 = vmatpush1.bf16.msra.mxu1 %v1623_v2  ;;  %v1666_v2 = vld [vmem:[#allocation10 + $0xc0] sm:$0xff]  }
  0x9c   :  { %v1702_v57 = vpop.eup %1701  ;;  %540 = vmatprep.subr.bf16.mxu1 %v1626_v3 }
  0x9d   :  { %v137_v58 = vmul.f32 %v1702_v57, %v2035_v20  ;;  %v138_v59 = vmul.f32 %v1702_v57, %v2038_v21  ;;  %v1658_v57 = vld [vmem:[#allocation10 + $0x60] sm:$0xff]  }
  0x9f   :  { %v141_v60 = vpack.c.bf16 %v138_v59, %v137_v58 }
  0xa1   :  { %1544 = vmatpush3.bf16.msra.mxu0 %v141_v60  ;;  %v1661_v60 = vld [vmem:[#allocation10 + $0x28] sm:$0xff]  }
  0xa4   :  { %1546 = vmatmul.mubr.msk.bf16.vlgmr.msra.gmra.mrb[0].mxu0 %vm147_vm3, %v1575_v61  ;;  %v1662_v61 = vld [vmem:[#allocation10 + $0x70] sm:$0xff]  }
  0xa5   :  { %645 = vmatprep.mubr.bf16.mxu0 %v1896_v4 }
 0x177   :  { %v2051_v6 = vpop.f32.mrb[0].mxu0 }
 0x178   :  { %v192_v8 = vsub.f32 %v137_v58, %v2051_v6  ;;  %v1547_v9 = vpop.f32.mrb[1].mxu0  ;;  %v1659_v58 = vld [vmem:[#allocation10 + $0x20] sm:$0xff]  }
 0x179   :  { %v2057_v10 = vpop.f32.mrb[2].mxu0 }
 0x17a   :  { %v193_v11 = vsub.f32 %v138_v59, %v2057_v10  ;;  %v1548_v12 = vpop.f32.mrb[3].mxu0  ;;  %v194_v13 = vrot.slane %v192_v8, 7  ;;  %v201_v14 = vrot.slane %v192_v8, 1  ;;  %v1660_v59 = vld [vmem:[#allocation10 + $0x68] sm:$0xff]  }
 0x17b   :  { %v591_v12 = vld [vmem:[#allocation8 + $0x10] sm:$0xff] }
 0x17c   :  { %v195_v15 = vrot.slane %v193_v11, 7  ;;  %v202_v16 = vrot.slane %v193_v11, 1  ;;  %v207_v17 = vpack.c.bf16 %v193_v11, %v192_v8  ;;  %v589_v8 = vld [vmem:[#allocation8] sm:$0xff]  ;;  %v590_v11 = vld [vmem:[#allocation8 + $0x8] sm:$0xff] }
 0x17e   :  { %529 = vmatprep.mubr.bf16.mxu1 %v207_v17  ;;  %v199_v20 = vsel %vm198_vm4, %v194_v13, %v195_v15  ;;  %v200_v21 = vsel %vm198_vm4, %v195_v15, %v194_v13  ;;  %v204_v22 = vsel %vm203_vm5, %v201_v14, %v202_v16  ;;  %v205_v23 = vsel %vm203_vm5, %v202_v16, %v201_v14  ;;  %v592_v13 = vld [vmem:[#allocation8 + $0x18] sm:$0xff] }
 0x17f   :  { %v206_v24 = vpack.c.bf16 %v199_v20, %v200_v21  ;;  %v208_v26 = vpack.c.bf16 %v205_v23, %v204_v22  ;;  %v593_v20 = vld [vmem:[#allocation8 + $0x20] sm:$0xff]  ;;  %v594_v21 = vld [vmem:[#allocation8 + $0x28] sm:$0xff]  ;;  %v595_v23 = vld [vmem:[#allocation8 + $0x30] sm:$0xff] }
 0x181   :  { %530 = vmatmul.mubr.bf16.vlgmr.msra.gmra.mrb[0].mxu1 %v206_v24 }
 0x182   :  { %541 = vmatpush1.bf16.msra.mxu1 %v1624_v18  ;;  %572 = vmatprep.mubr.bf16.mxu1 %v1896_v4 }
 0x183   :  { %542 = vmatprep.subr.bf16.mxu1 %v1629_v25 }
 0x186   :  { %543 = vmatpush1.bf16.msra.mxu1 %v1627_v27  ;;  %v596_v27 = vld [vmem:[#allocation8 + $0x38] sm:$0xff] }
 0x187   :  { %544 = vmatprep.subr.bf16.mxu1 %v1632_v28  ;;  %v691_v28 = vand.u32 127, %v196_v5 }
 0x189   :  { %vm697_vm6 = vcmp.lt.s32.totalorder %v691_v28, 16 }
 0x18a   :  { %545 = vmatpush1.bf16.msra.mxu1 %v1630_v29 }
 0x18b   :  { %546 = vmatprep.subr.bf16.mxu1 %v1635_v30 }
 0x18e   :  { %547 = vmatpush1.bf16.msra.mxu1 %v1633_v31 }
 0x18f   :  { %548 = vmatprep.subr.bf16.mxu1 %v1638_v32 }
 0x192   :  { %549 = vmatpush1.bf16.msra.mxu1 %v1636_v33 }
 0x193   :  { %550 = vmatprep.subr.bf16.mxu1 %v1641_v34 }
 0x196   :  { %551 = vmatpush1.bf16.msra.mxu1 %v1639_v35 }
 0x197   :  { %552 = vmatprep.subr.bf16.mxu1 %v1644_v36 }
 0x19a   :  { %553 = vmatpush1.bf16.msra.mxu1 %v1642_v37 }
 0x19b   :  { %554 = vmatprep.subr.bf16.mxu1 %v1647_v38 }
 0x19e   :  { %555 = vmatpush1.bf16.msra.mxu1 %v1645_v39 }
 0x19f   :  { %1549 = vmatprep.subr.bf16.mxu1 %v1894_v0 }
 0x1a1   :  { %573 = vmatmul.mubr.bf16.vlgmr.msra.gmra.mrb[0].mxu1 %v208_v26 }
 0x1a2   :  { %1551 = vmatprep.mubr.msk.bf16.mxu1 %vm1895_vm0, %v1894_v0 }
 0x274   :  { %v574_v40 = vpop.f32.mrb[0].mxu1 }
 0x275   :  { %v576_v41 = vpop.f32.mrb[1].mxu1 }
 0x276   :  { %v578_v42 = vpop.f32.mrb[2].mxu1 }
 0x277   :  { %v587_v43 = vpack.c.bf16 %v578_v42, %v574_v40  ;;  %v580_v44 = vpop.f32.mrb[3].mxu1 }
 0x278   :  { %v588_v45 = vpack.c.bf16 %v580_v44, %v576_v41 }
 0x27a   :  { %613 = vmatprep.subr.bf16.mxu0 %v588_v45 }
 0x27b   :  { %614 = vmatpush1.bf16.msra.mxu0 %v587_v43 }
 0x27c   :  { %1475 = vmatprep.subr.bf16.mxu0 %v1650_v48 }
 0x27e   :  { %1420 = vmatmul.mubr.msk.bf16.vlgmr.msra.gmra.mrb[4].mxu0 %vm147_vm3, %v1648_v46 }
 0x27f   :  { %655 = vmatprep.mubr.bf16.mxu0 %v1896_v4  ;;  %1476 = vmatpush3.bf16.msra.mxu0 %v1651_v49 }
 0x280   :  { %1477 = vmatprep.subr.bf16.mxu0 %v1652_v50 }
 0x283   :  { %1478 = vmatpush3.bf16.msra.mxu0 %v1653_v51 }
 0x284   :  { %1479 = vmatprep.subr.bf16.mxu0 %v1654_v52 }
 0x286   :  { %1421 = vmatmul.mubr.msk.bf16.gmra.mrb[8].mxu0 %vm147_vm3, %v1649_v47 }
 0x287   :  { %1480 = vmatpush3.bf16.msra.mxu0 %v1655_v53 }
 0x288   :  { %1481 = vmatprep.subr.bf16.mxu0 %v1656_v54 }
 0x28b   :  { %1482 = vmatpush3.bf16.msra.mxu0 %v1657_v55 }
 0x28c   :  { %1483 = vmatprep.subr.bf16.mxu0 %v1658_v57 }
 0x28f   :  { %1484 = vmatpush3.bf16.msra.mxu0 %v1659_v58  ;;  %v666_v58 = vld [vmem:[#allocation2] sm:$0xff] }
 0x290   :  { %1485 = vmatprep.subr.bf16.mxu0 %v1660_v59  ;;  %v1422_v59 = vsel %vm697_vm6, 1.0, %v1894_v0 }
 0x293   :  { %1486 = vmatpush3.bf16.msra.mxu0 %v1661_v60 }
 0x294   :  { %1487 = vmatprep.subr.bf16.mxu0 %v1662_v61 }
 0x297   :  { %1488 = vmatpush3.bf16.msra.mxu0 %v1663_v62  ;;  %v667_v62 = vld [vmem:[#allocation2 + $0x8] sm:$0xff] }
 0x298   :  { %1489 = vmatprep.subr.bf16.mxu0 %v1664_v63 }
 0x29b   :  { %1490 = vmatpush3.bf16.msra.mxu0 %v1665_v1  ;;  %v668_v1 = vld [vmem:[#allocation2 + $0x10] sm:$0xff] }
 0x29c   :  { %1497 = vmatprep.subr.bf16.mxu0 %v1666_v2 }
 0x351   :  { %v647_v3 = vpop.f32.mrb[4].mxu0 }
 0x352   :  { %v649_v4 = vpop.f32.mrb[5].mxu0  ;;  %v2083_v15 = vadd.f32 %v647_v3, %v589_v8 }
 0x353   :  { %v651_v9 = vpop.f32.mrb[6].mxu0  ;;  %v2085_v16 = vadd.f32 %v649_v4, %v590_v11 }
 0x354   :  { %v653_v14 = vpop.f32.mrb[7].mxu0  ;;  %v2087_v17 = vadd.f32 %v651_v9, %v591_v12  ;;  %v707_v24 = vmul.f32 %v2083_v15, %v2083_v15  ;;  %v669_v12 = vld [vmem:[#allocation2 + $0x18] sm:$0xff] }
 0x355   :  { %v2089_v18 = vadd.f32 %v653_v14, %v592_v13  ;;  %v708_v29 = vmul.f32 %v2085_v16, %v2085_v16 }
 0x356   :  { %v709_v30 = vmul.f32 %v2087_v17, %v2087_v17 }
 0x357   :  { %v2100_v31 = vmul.f32 %v2089_v18, %v2089_v18 }
 0x359   :  { %v657_v22 = vpop.f32.mrb[8].mxu0 }
 0x35a   :  { %v658_v25 = vadd.f32 %v657_v22, %v593_v20  ;;  %v659_v26 = vpop.f32.mrb[9].mxu0 }
 0x35b   :  { %v660_v32 = vadd.f32 %v659_v26, %v594_v21  ;;  %v661_v33 = vpop.f32.mrb[10].mxu0 }
 0x35c   :  { %v670_v34 = vmul.f32 0.5, %v658_v25  ;;  %v703_v35 = vadd.f32 1.0, %v658_v25  ;;  %v715_v36 = vmul.f32 1.442695, %v658_v25  ;;  %v662_v37 = vadd.f32 %v661_v33, %v595_v23  ;;  %v663_v38 = vpop.f32.mrb[11].mxu0 }
 0x35d   :  { %v671_v39 = vmul.f32 0.5, %v660_v32  ;;  %v704_v40 = vadd.f32 1.0, %v660_v32  ;;  %v717_v5 = vmul.f32 1.442695, %v660_v32  ;;  %v664_v41 = vadd.f32 %v663_v38, %v596_v27 }
 0x35e   :  { %v674_v42 = vmul.f32 1.442695, %v670_v34  ;;  %1703 = vpow2.f32 %v715_v36  ;;  %v672_v43 = vmul.f32 0.5, %v662_v37  ;;  %v705_v44 = vadd.f32 1.0, %v662_v37 }
 0x35f   :  { %v676_v45 = vmul.f32 1.442695, %v671_v39  ;;  %1705 = vpow2.f32 %v717_v5  ;;  %v719_v46 = vmul.f32 1.442695, %v662_v37  ;;  %v673_v47 = vmul.f32 0.5, %v664_v41 }
 0x360   :  { %1707 = vpow2.f32 %v674_v42  ;;  %v678_v48 = vmul.f32 1.442695, %v672_v43  ;;  %v713_v49 = vsub.f32 %v705_v44, %v709_v30  ;;  %v706_v50 = vadd.f32 1.0, %v664_v41 }
 0x361   :  { %1709 = vpow2.f32 %v676_v45  ;;  %v680_v51 = vmul.f32 1.442695, %v673_v47  ;;  %v721_v52 = vmul.f32 1.442695, %v664_v41  ;;  %v711_v53 = vsub.f32 %v703_v35, %v707_v24 }
 0x362   :  { %1711 = vpow2.f32 %v678_v48  ;;  %v712_v54 = vsub.f32 %v704_v40, %v708_v29  ;;  %v714_v55 = vsub.f32 %v706_v50, %v2100_v31  ;;  %v1668_v50 = vld [vmem:[#allocation10 + $0xc8] sm:$0xff]  }
 0x363   :  { %1713 = vpow2.f32 %v719_v46  ;;  %v1667_v46 = vld [vmem:[#allocation10 + $0x80] sm:$0xff]  }
 0x364   :  { %1715 = vpow2.f32 %v680_v51 }
 0x365   :  { %1717 = vpow2.f32 %v721_v52  ;;  %v1669_v52 = vld [vmem:[#allocation10 + $0x88] sm:$0xff]  }
 0x368   :  { %v1704_v57 = vpop.eup %1703 }
 0x369   :  { %v1706_v60 = vpop.eup %1705  ;;  %v723_v61 = vsub.f32 %v711_v53, %v1704_v57  ;;  %v1670_v53 = vld [vmem:[#allocation10 + $0xd0] sm:$0xff]   ;;  %v1673_v57 = vld [vmem:[#allocation10 + $0x98] sm:$0xff]  }
 0x36a   :  { %v1708_v63 = vpop.eup %1707  ;;  %v724_v2 = vsub.f32 %v712_v54, %v1706_v60  ;;  %v1671_v54 = vld [vmem:[#allocation10 + $0x90] sm:$0xff]   ;;  %v1677_v60 = vld [vmem:[#allocation10 + $0xa8] sm:$0xff]  }
 0x36b   :  { %v1710_v3 = vpop.eup %1709  ;;  %v682_v4 = vmul.f32 %v1708_v63, %v666_v58  ;;  %v727_v8 = vmul.f32 %v1422_v59, %v723_v61  ;;  %v1675_v58 = vld [vmem:[#allocation10 + $0xa0] sm:$0xff]   ;;  %v1678_v61 = vld [vmem:[#allocation10 + $0xf0] sm:$0xff]   ;;  %v1680_v63 = vld [vmem:[#allocation10 + $0xf8] sm:$0xff]  }
 0x36c   :  { %v1712_v9 = vpop.eup %1711  ;;  %v728_v11 = vmul.f32 0.0, %v724_v2  ;;  %v683_v13 = vmul.f32 %v1710_v3, %v667_v62  ;;  %v1679_v62 = vld [vmem:[#allocation10 + $0xb0] sm:$0xff]   ;;  %v1682_v2 = vld [vmem:[#allocation10 + $0x140] sm:$0xff]  }
 0x36d   :  { %v1714_v14 = vpop.eup %1713  ;;  %v2105_v20 = vadd.f32 %v682_v4, %v2083_v15  ;;  %v684_v21 = vmul.f32 %v1712_v9, %v668_v1  ;;  %v1681_v1 = vld [vmem:[#allocation10 + $0xb8] sm:$0xff]   ;;  %v1683_v3 = vld [vmem:[#allocation10 + $0x100] sm:$0xff]   ;;  %v1684_v4 = vld [vmem:[#allocation10 + $0x148] sm:$0xff]  }
 0x36e   :  { %v1716_v22 = vpop.eup %1715  ;;  %v731_v0 = vadd.f32 %v728_v11, %v727_v8  ;;  %v725_v23 = vsub.f32 %v713_v49, %v1714_v14  ;;  %v687_v24 = vadd.f32 %v683_v13, %v2085_v16  ;;  %v1685_v8 = vld [vmem:[#allocation10 + $0x108] sm:$0xff]   ;;  %v1686_v9 = vld [vmem:[#allocation10 + $0x150] sm:$0xff]   ;;  %v1689_v13 = vld [vmem:[#allocation10 + $0x118] sm:$0xff]  }
 0x36f   :  { %v1718_v25 = vpop.eup %1717  ;;  %v2109_v26 = vadd.f32 %v684_v21, %v2087_v17  ;;  %v685_v27 = vmul.f32 %v1716_v22, %v669_v12  ;;  %v745_v30 = vrot.slane %v2105_v20, 7  ;;  %v753_v17 = vrot.slane %v2105_v20, 1  ;;  %v1687_v11 = vld [vmem:[#allocation10 + $0x110] sm:$0xff]   ;;  %v1688_v12 = vld [vmem:[#allocation10 + $0x158] sm:$0xff]   ;;  %v1690_v14 = vld [vmem:[#allocation10 + $0x160] sm:$0xff]  }
 0x370   :  { %732 = vadd.xlane.f32.xlu0 %v731_v0  ;;  %v726_v28 = vsub.f32 %v714_v55, %v1718_v25  ;;  %v729_v29 = vmul.f32 %v1422_v59, %v725_v23  ;;  %v746_v34 = vrot.slane %v687_v24, 7  ;;  %v754_v35 = vrot.slane %v687_v24, 1  ;;  %v1672_v55 = vld [vmem:[#allocation10 + $0xd8] sm:$0xff]   ;;  %v1676_v59 = vld [vmem:[#allocation10 + $0xe8] sm:$0xff]   ;;  %v1694_v0 = vld [vmem:[#allocation10 + $0x170] sm:$0xff]  }
 0x371   :  { %v689_v31 = vadd.f32 %v685_v27, %v2089_v18  ;;  %v747_v15 = vrot.slane %v2109_v26, 7  ;;  %v763_v32 = vpack.c.bf16 %v2109_v26, %v2105_v20  ;;  %v755_v33 = vrot.slane %v2109_v26, 1  ;;  %v1691_v20 = vld [vmem:[#allocation10 + $0x120] sm:$0xff]   ;;  %v1692_v21 = vld [vmem:[#allocation10 + $0x168] sm:$0xff]   ;;  %v1695_v23 = vld [vmem:[#allocation10 + $0x130] sm:$0xff]  }
 0x372   :  { %v730_v16 = vmul.f32 0.0, %v726_v28  ;;  %v1693_v22 = vld [vmem:[#allocation10 + $0x128] sm:$0xff]   ;;  %v1697_v25 = vld [vmem:[#allocation10 + $0x138] sm:$0xff]  }
 0x373   :  { %v748_v36 = vrot.slane %v689_v31, 7  ;;  %v749_v37 = vsel %vm198_vm4, %v745_v30, %v747_v15  ;;  %v751_v38 = vsel %vm198_vm4, %v747_v15, %v745_v30  ;;  %v764_v18 = vpack.c.bf16 %v689_v31, %v687_v24  ;;  %v1696_v24 = vld [vmem:[#allocation10 + $0x178] sm:$0xff]  }
 0x374   :  { %v734_v39 = vadd.f32 %v730_v16, %v729_v29  ;;  %v761_v40 = vpack.c.bf16 %v749_v37, %v751_v38  ;;  %v756_v5 = vrot.slane %v689_v31, 1  ;;  %v2124_v41 = vsel %vm203_vm5, %v753_v17, %v755_v33 }
 0x375   :  { %v750_v42 = vsel %vm198_vm4, %v746_v34, %v748_v36  ;;  %v752_v43 = vsel %vm198_vm4, %v748_v36, %v746_v34  ;;  %v2132_v44 = vsel %vm203_vm5, %v755_v33, %v753_v17 }
 0x376   :  { %735 = vadd.xlane.f32.xlu0 %v734_v39  ;;  %v762_v45 = vpack.c.bf16 %v750_v42, %v752_v43  ;;  %v758_v47 = vsel %vm203_vm5, %v754_v35, %v756_v5  ;;  %v760_v48 = vsel %vm203_vm5, %v756_v5, %v754_v35  ;;  %v765_v49 = vpack.c.bf16 %v2132_v44, %v2124_v41 }
 0x377   :  { %v766_v51 = vpack.c.bf16 %v760_v48, %v758_v47 }
 0x378   :  { %1185 = vmatprep.mubr.bf16.mxu0 %v762_v45 }
 0x379   :  { %1186 = vmatmul.mubr.bf16.vlgmr.msra.gmra.mrb[12].mxu0 %v761_v40 }
 0x37a   :  { %1498 = vmatpush3.bf16.msra.mxu0 %v1667_v46  ;;  %1226 = vmatprep.mubr.bf16.mxu0 %v764_v18 }
 0x37b   :  { %1499 = vmatprep.subr.bf16.mxu0 %v1668_v50 }
 0x37e   :  { %1500 = vmatpush3.bf16.msra.mxu0 %v1669_v52 }
 0x37f   :  { %1501 = vmatprep.subr.bf16.mxu0 %v1670_v53 }
 0x382   :  { %1502 = vmatpush3.bf16.msra.mxu0 %v1671_v54 }
 0x383   :  { %1503 = vmatprep.subr.bf16.mxu0 %v1672_v55 }
 0x386   :  { %1504 = vmatpush3.bf16.msra.mxu0 %v1673_v57 }
 0x387   :  { %1505 = vmatprep.subr.bf16.mxu0 %v1674_v7 }
 0x38a   :  { %1506 = vmatpush3.bf16.msra.mxu0 %v1675_v58 }
 0x38b   :  { %1507 = vmatprep.subr.bf16.mxu0 %v1676_v59 }
 0x38e   :  { %1508 = vmatpush3.bf16.msra.mxu0 %v1677_v60 }
 0x38f   :  { %1509 = vmatprep.subr.bf16.mxu0 %v1678_v61 }
 0x392   :  { %1510 = vmatpush3.bf16.msra.mxu0 %v1679_v62 }
 0x393   :  { %1511 = vmatprep.subr.bf16.mxu0 %v1680_v63 }
 0x396   :  { %1512 = vmatpush3.bf16.msra.mxu0 %v1681_v1 }
 0x397   :  { %1519 = vmatprep.subr.bf16.mxu0 %v1682_v2 }
 0x399   :  { %1227 = vmatmul.mubr.bf16.vlgmr.msra.gmra.mrb[16].mxu0 %v763_v32 }
 0x39a   :  { %1520 = vmatpush3.bf16.msra.mxu0 %v1683_v3  ;;  %1267 = vmatprep.mubr.bf16.mxu0 %v766_v51 }
 0x39b   :  { %1521 = vmatprep.subr.bf16.mxu0 %v1684_v4 }
 0x39e   :  { %1522 = vmatpush3.bf16.msra.mxu0 %v1685_v8 }
 0x39f   :  { %1523 = vmatprep.subr.bf16.mxu0 %v1686_v9 }
 0x3a2   :  { %1524 = vmatpush3.bf16.msra.mxu0 %v1687_v11 }
 0x3a3   :  { %1525 = vmatprep.subr.bf16.mxu0 %v1688_v12 }
 0x3a6   :  { %1526 = vmatpush3.bf16.msra.mxu0 %v1689_v13 }
 0x3a7   :  { %1527 = vmatprep.subr.bf16.mxu0 %v1690_v14 }
 0x3aa   :  { %1528 = vmatpush3.bf16.msra.mxu0 %v1691_v20 }
 0x3ab   :  { %1529 = vmatprep.subr.bf16.mxu0 %v1692_v21 }
 0x3ae   :  { %1530 = vmatpush3.bf16.msra.mxu0 %v1693_v22 }
 0x3af   :  { %1531 = vmatprep.subr.bf16.mxu0 %v1694_v0 }
 0x3b2   :  { %1532 = vmatpush3.bf16.msra.mxu0 %v1695_v23 }
 0x3b3   :  { %1533 = vmatprep.subr.bf16.mxu0 %v1696_v24 }
 0x3b6   :  { %1534 = vmatpush3.bf16.msra.mxu0 %v1697_v25 }
 0x3b9   :  { %1268 = vmatmul.mubr.bf16.vlgmr.msra.gmra.mrb[20].mxu0 %v765_v49 }
 0x3fd   :  { %v733_v26 = vpop.xlane.xlu0 %732 }
 0x403   :  { %v736_v27 = vpop.xlane.xlu0 %735 }
 0x404   :  { %v737_v28 = vadd.f32 %v736_v27, %v733_v26 }
 0x406   :  { %v738_v29 = vrot.slane %v737_v28, 4 }
 0x408   :  { %v739_v30 = vadd.f32 %v738_v29, %v737_v28 }
 0x40a   :  { %v740_v31 = vrot.slane %v739_v30, 2 }
 0x40c   :  { %v741_v15 = vadd.f32 %v740_v31, %v739_v30 }
 0x40e   :  { %v742_v32 = vrot.slane %v741_v15, 1 }
 0x410   :  { %v743_v33 = vadd.f32 %v742_v32, %v741_v15 }
 0x412   :  { %v744_v16 = vmul.f32 -0.5, %v743_v33 }
 0x414   :  { %1334 = vst [vmem:[#allocation12] sm:$0xff] %v744_v16 }
 0x44c   :  { %v1491_v34 = vpop.f32.mrb[12].mxu0 }
 0x44d   :  { %v1492_v35 = vpop.f32.mrb[13].mxu0 }
 0x44e   :  { %v1493_v17 = vadd.f32 %v1492_v35, %v1491_v34  ;;  %v1494_v36 = vpop.f32.mrb[14].mxu0 }
 0x44f   :  { %v1495_v37 = vpop.f32.mrb[15].mxu0 }
 0x450   :  { %v1188_v38 = vadd.f32 %v1493_v17, %v2051_v6  ;;  %v1496_v18 = vadd.f32 %v1495_v37, %v1494_v36 }
 0x452   :  { %v1191_v39 = vadd.f32 %v1496_v18, %v2057_v10  ;;  %v1698_v10 = vld [vmem:[%s2193_s7] sm:$0xff]  }
 0x46c   :  { %v1513_v40 = vpop.f32.mrb[16].mxu0 }
 0x46d   :  { %v1514_v5 = vpop.f32.mrb[17].mxu0 }
 0x46e   :  { %v1515_v41 = vadd.f32 %v1514_v5, %v1513_v40  ;;  %v1516_v42 = vpop.f32.mrb[18].mxu0 }
 0x46f   :  { %v1517_v43 = vpop.f32.mrb[19].mxu0 }
 0x470   :  { %v1229_v44 = vadd.f32 %v1515_v41, %v1188_v38  ;;  %v1518_v45 = vadd.f32 %v1517_v43, %v1516_v42 }
 0x472   :  { %v1232_v46 = vadd.f32 %v1518_v45, %v1191_v39 }
 0x48c   :  { %v1535_v47 = vpop.f32.mrb[20].mxu0 }
 0x48d   :  { %v1536_v48 = vpop.f32.mrb[21].mxu0 }
 0x48e   :  { %v1537_v49 = vadd.f32 %v1536_v48, %v1535_v47  ;;  %v1538_v50 = vpop.f32.mrb[22].mxu0 }
 0x48f   :  { %v1539_v51 = vpop.f32.mrb[23].mxu0 }
 0x490   :  { %v1270_v52 = vadd.f32 %v1537_v49, %v1229_v44  ;;  %v1540_v53 = vadd.f32 %v1539_v51, %v1538_v50 }
 0x492   :  { %v1273_v54 = vadd.f32 %v1540_v53, %v1232_v46 }
 0x494   :  { %v1276_v6 = vpack.c.bf16 %v1273_v54, %v1270_v52 }
 0x496   :  { %1550 = vmatpush3.bf16.msra.mxu1 %v1276_v6 }
 0x499   :  { %1552 = vmatmul.mubr.msk.bf16.vlgmr.msra.gmra.mrb[4].mxu1 %vm147_vm3, %v1698_v10 }
 0x49a   :  { %1840 = shalt.err (!%p1837_p2)
}
 0x49b   :  { %s1841_s11 = scalar_lea.hbm %s2196_s10, 128 }
 0x49c   :  { %p1842_p3 = scmp.ne.s32.totalorder %s2196_s10, %s1841_s11  ;;  %p1845_p4 = scmp.lt.u32.totalorder %s1841_s11, %s2196_s10 }
 0x49e   :  { %p1847_p5 = pnand %p1845_p4, %p1842_p3 }
 0x4a0   :  { %1850 = shalt.err (!%p1847_p5)
}
 0x4a1   :  { %1356 = dma.vmem_to_hbm [thread:$0]  %s1354_s14, 128, %s2196_s10, [#allocation13]   ;;  %v1277_v55 = vld [vmem:[%s2194_s8] sm:$0xff]  ;;  %v1278_v7 = vld [vmem:[%s2194_s8 + $0x8] sm:$0xff] }
 0x4a2   :  { %s1898_s2 = smov [#allocation11]  }
 0x4a3   :  { %s1340_s20 = sshll.u32 %s1898_s2, 4  ;;  %s1341_s20 = int_to_ptr.vmem [resolvable:$true] %s1340_s20 }
 0x4a4   :  { %s1851_s10 = scalar_lea.vmem %s1341_s20, 256  ;;  %p1856_p7 = scmp.lt.s32.totalorder %s1341_s20, %s1341_s20 }
 0x4a5   :  { %p1852_p6 = scmp.ne.s32.totalorder %s1341_s20, %s1851_s10  ;;  %p1857_p8 = scmp.lt.s32.totalorder %s1851_s10, %s1851_s10 }
 0x4a7   :  { %p1858_p9 = por %p1857_p8, %p1856_p7 }
 0x4a9   :  { %p1859_p10 = pnand %p1858_p9, %p1852_p6 }
 0x56c   :  { %v1321_v57 = vpop.f32.mrb[4].mxu1 }
 0x56d   :  { %v1322_v58 = vadd.f32 %v1321_v57, %v1277_v55  ;;  %v1553_v59 = vpop.f32.mrb[5].mxu1 }
 0x56e   :  { %v1324_v60 = vpop.f32.mrb[6].mxu1 }
 0x56f   :  { %v1328_v61 = vmul.f32 %v1322_v58, %v2044_v56  ;;  %v1325_v62 = vadd.f32 %v1324_v60, %v1278_v7  ;;  %v1554_v63 = vpop.f32.mrb[7].mxu1 }
 0x571   :  { %v1330_v1 = vadd.f32 %v1328_v61, %v2032_v19  ;;  %v1329_v2 = vmul.f32 %v1325_v62, %v2044_v56 }
 0x573   :  { %1332 = vst [vmem:[#allocation11] sm:$0xff] %v1330_v1  ;;  %v1331_v3 = vadd.f32 %v1329_v2, %v2032_v19 }
 0x575   :  { %1333 = vst [vmem:[#allocation11 + $0x8] sm:$0xff] %v1331_v3 }
 0x576   :  { %1862 = shalt.err (!%p1859_p10)
}
 0x577   :  { %s1863_s22 = scalar_lea.hbm %s2195_s9, 256 }
 0x578   :  { %p1864_p11 = scmp.ne.s32.totalorder %s2195_s9, %s1863_s22  ;;  %p1867_p12 = scmp.lt.u32.totalorder %s1863_s22, %s2195_s9 }
 0x57a   :  { %p1869_p13 = pnand %p1867_p12, %p1864_p11 }
 0x57c   :  { %1872 = shalt.err (!%p1869_p13)
}
 0x57d   :  { %1346 = dma.vmem_to_hbm [thread:$0]  %s1341_s20, 256, %s2195_s9, [#allocation4], %s1891_s1, %s1891_s1, %s1892_s30  }
 0x57e   :  { %1879 = dma.done.wait [#allocation4], 256  }
 0x57f   :  { %1880 = vsyncadd [#allocation4], 4294967040 }
 0x580   :  { %1881 = dma.done.wait [#allocation13], 128  }
 0x581   :  { %1882 = vsyncadd [#allocation13], 4294967168 }
 0x582   :  { %1363 = vsyncpa [#allocation3], 1 }
 0x583   :  { %1364 = vsyncpa [#allocation6], 1 }
 0x584   :  { %1365 = vsyncpa [#allocation9], 1 }
 0x585   :  { %1366 = vsyncpa [#allocation4], 1 }
 0x586   :  { %1367 = vsyncpa [#allocation13], 1 }

// kernel: tpu_custom_call.1
= control target key start
LH: loop header
LB: loop body
LE: loop exit
PB: predicated region body
PF: predicated region fallthrough
CT: control target
= control target key end

     0   :  { %16 = vsyncpa [#allocation3], 0  ;;  %s2186_s0 = inlined_call_operand.vmem [shape: f32[16,128], index: 0, kind: input, shape index: {}]   ;;  %s2187_s1 = inlined_call_operand.hbm [shape: f32[16,256], index: 1, kind: input, shape index: {}]   ;;  %s2188_s2 = inlined_call_operand.hbm [shape: bf16[16,16], index: 2, kind: input, shape index: {}]   ;;  %s2189_s3 = inlined_call_operand.hbm [shape: bf16[384,256], index: 3, kind: input, shape index: {}]   ;;  %s2190_s4 = inlined_call_operand.vmem [shape: bf16[32,16], index: 4, kind: input, shape index: {}]   ;;  %s2191_s5 = inlined_call_operand.hbm [shape: f32[32,256], index: 5, kind: input, shape index: {}]   ;;  %s2192_s6 = inlined_call_operand.hbm [shape: bf16[768,128], index: 6, kind: input, shape index: {}]   ;;  %s2193_s7 = inlined_call_operand.vmem [shape: bf16[16,16], index: 7, kind: input, shape index: {}]   ;;  %s2194_s8 = inlined_call_operand.vmem [shape: f32[16,128], index: 8, kind: input, shape index: {}]   ;;  %s2195_s9 = inlined_call_operand.hbm [shape: f32[16,128], index: 9, kind: output, shape index: {0}]   ;;  %s2196_s10 = inlined_call_operand.hbm [shape: f32[8,128], index: 10, kind: output, shape index: {1}]  }
   0x1   :  { %17 = vsyncpa [#allocation6], 0 }
   0x2   :  { %18 = vsyncpa [#allocation9], 0 }
   0x3   :  { %19 = vsyncpa [#allocation4], 0 }
   0x4   :  { %20 = vsyncpa [#allocation13], 0  ;;  %s1883_s13 = smov [#allocation5]   ;;  %s1719_s17 = scalar_lea.hbm %s2188_s2, 128 }
   0x5   :  { %s40_s14 = sshll.u32 %s1883_s13, 4  ;;  %p1720_p0 = scmp.ne.s32.totalorder %s2188_s2, %s1719_s17  ;;  %s41_s14 = int_to_ptr.vmem [resolvable:$true] %s40_s14 }
   0x6   :  { %p1723_p1 = scmp.lt.u32.totalorder %s1719_s17, %s2188_s2 }
   0x8   :  { %p1725_p2 = pnand %p1723_p1, %p1720_p0 }
   0xa   :  { %1728 = shalt.err (!%p1725_p2)
}
   0xb   :  { %s1729_s22 = scalar_lea.vmem %s41_s14, 128  ;;  %p1734_p4 = scmp.lt.s32.totalorder %s41_s14, %s41_s14 }
   0xc   :  { %p1730_p3 = scmp.ne.s32.totalorder %s41_s14, %s1729_s22  ;;  %p1735_p5 = scmp.lt.s32.totalorder %s1729_s22, %s1729_s22 }
   0xe   :  { %p1736_p6 = por %p1735_p5, %p1734_p4 }
  0x10   :  { %p1737_p7 = pnand %p1736_p6, %p1730_p3 }
  0x12   :  { %1740 = shalt.err (!%p1737_p7)
}
  0x13   :  { %s1884_s23 = smov 64   ;;  %s1885_s24 = smov 4  }
  0x14   :  { %46 = dma.hbm_to_vmem [thread:$0]  %s2188_s2, 128, %s41_s14, [#allocation6], %s1884_s23, %s1884_s23, %s1885_s24  }
  0x15   :  { %s1886_s27 = smov [#allocation8]   ;;  %s1887_s29 = smov [#allocation2]  }
  0x16   :  { %s66_s28 = sshll.u32 %s1886_s27, 4  ;;  %s28_s30 = sshll.u32 %s1887_s29, 4  ;;  %s67_s28 = int_to_ptr.vmem [resolvable:$true] %s66_s28  ;;  %s29_s30 = int_to_ptr.vmem [resolvable:$true] %s28_s30 }
  0x17   :  { %s1741_s13 = scalar_lea.hbm %s2191_s5, 1024 }
  0x18   :  { %p1742_p8 = scmp.ne.s32.totalorder %s2191_s5, %s1741_s13  ;;  %p1745_p9 = scmp.lt.u32.totalorder %s1741_s13, %s2191_s5 }
  0x1a   :  { %p1747_p10 = pnand %p1745_p9, %p1742_p8 }
  0x1c   :  { %1750 = shalt.err (!%p1747_p10)
}
  0x1d   :  { %s1751_s2 = scalar_lea.vmem %s67_s28, 1024  ;;  %p1756_p12 = scmp.lt.s32.totalorder %s67_s28, %s67_s28 }
  0x1e   :  { %p1752_p11 = scmp.ne.s32.totalorder %s67_s28, %s1751_s2  ;;  %p1757_p13 = scmp.lt.s32.totalorder %s1751_s2, %s1751_s2 }
  0x20   :  { %p1758_p0 = por %p1757_p13, %p1756_p12 }
  0x22   :  { %p1759_p1 = pnand %p1758_p0, %p1752_p11 }
  0x24   :  { %1762 = shalt.err (!%p1759_p1)
}
  0x25   :  { %s1888_s14 = smov 256   ;;  %s1889_s19 = smov 16  }
  0x26   :  { %72 = dma.hbm_to_vmem [thread:$0]  %s2191_s5, 1024, %s67_s28, [#allocation9], %s1888_s14, %s1888_s14, %s1889_s19  }
  0x27   :  { %s1763_s26 = scalar_lea.hbm %s2187_s1, 512 }
  0x28   :  { %p1764_p2 = scmp.ne.s32.totalorder %s2187_s1, %s1763_s26  ;;  %p1767_p3 = scmp.lt.u32.totalorder %s1763_s26, %s2187_s1 }
  0x2a   :  { %p1769_p4 = pnand %p1767_p3, %p1764_p2 }
  0x2c   :  { %1772 = shalt.err (!%p1769_p4)
}
  0x2d   :  { %s1773_s13 = scalar_lea.vmem %s29_s30, 512  ;;  %p1778_p6 = scmp.lt.s32.totalorder %s29_s30, %s29_s30 }
  0x2e   :  { %p1774_p5 = scmp.ne.s32.totalorder %s29_s30, %s1773_s13  ;;  %p1779_p7 = scmp.lt.s32.totalorder %s1773_s13, %s1773_s13 }
  0x30   :  { %p1780_p8 = por %p1779_p7, %p1778_p6 }
  0x32   :  { %p1781_p9 = pnand %p1780_p8, %p1774_p5 }
  0x34   :  { %1784 = shalt.err (!%p1781_p9)
}
  0x35   :  { %34 = dma.hbm_to_vmem [thread:$0]  %s2187_s1, 512, %s29_s30, [#allocation3], %s1888_s14, %s1888_s14, %s1889_s19  }
  0x36   :  { %s1890_s15 = smov [#allocation7]   ;;  %s1785_s2 = scalar_lea.hbm %s2189_s3, 6144 }
  0x37   :  { %s52_s16 = sshll.u32 %s1890_s15, 4  ;;  %p1786_p10 = scmp.ne.s32.totalorder %s2189_s3, %s1785_s2  ;;  %s53_s16 = int_to_ptr.vmem [resolvable:$true] %s52_s16 }
  0x38   :  { %p1789_p11 = scmp.lt.u32.totalorder %s1785_s2, %s2189_s3 }
  0x3a   :  { %p1791_p12 = pnand %p1789_p11, %p1786_p10 }
  0x3c   :  { %1794 = shalt.err (!%p1791_p12)
}
  0x3d   :  { %s1795_s26 = scalar_lea.vmem %s53_s16, 6144  ;;  %p1800_p0 = scmp.lt.s32.totalorder %s53_s16, %s53_s16 }
  0x3e   :  { %p1796_p13 = scmp.ne.s32.totalorder %s53_s16, %s1795_s26  ;;  %p1801_p1 = scmp.lt.s32.totalorder %s1795_s26, %s1795_s26 }
  0x40   :  { %p1802_p2 = por %p1801_p1, %p1800_p0 }
  0x42   :  { %p1803_p3 = pnand %p1802_p2, %p1796_p13 }
  0x44   :  { %1806 = shalt.err (!%p1803_p3)
}
  0x45   :  { %s1891_s1 = smov 128   ;;  %s1892_s30 = smov 8  }
  0x46   :  { %58 = dma.hbm_to_vmem [thread:$0]  %s2189_s3, 6144, %s53_s16, [#allocation6], %s1891_s1, %s1891_s1, %s1892_s30  }
  0x47   :  { %s1893_s27 = smov [#allocation10]   ;;  %s1807_s13 = scalar_lea.hbm %s2192_s6, 6144 }
  0x48   :  { %s78_s29 = sshll.u32 %s1893_s27, 4  ;;  %p1808_p4 = scmp.ne.s32.totalorder %s2192_s6, %s1807_s13  ;;  %s79_s29 = int_to_ptr.vmem [resolvable:$true] %s78_s29 }
  0x49   :  { %p1811_p5 = scmp.lt.u32.totalorder %s1807_s13, %s2192_s6 }
  0x4b   :  { %p1813_p6 = pnand %p1811_p5, %p1808_p4 }
  0x4d   :  { %1816 = shalt.err (!%p1813_p6)
}
  0x4e   :  { %s1817_s18 = scalar_lea.vmem %s79_s29, 6144  ;;  %p1822_p8 = scmp.lt.s32.totalorder %s79_s29, %s79_s29 }
  0x4f   :  { %p1818_p7 = scmp.ne.s32.totalorder %s79_s29, %s1817_s18  ;;  %p1823_p9 = scmp.lt.s32.totalorder %s1817_s18, %s1817_s18 }
  0x51   :  { %p1824_p10 = por %p1823_p9, %p1822_p8 }
  0x53   :  { %p1825_p11 = pnand %p1824_p10, %p1818_p7 }
  0x55   :  { %1828 = shalt.err (!%p1825_p11)
}
  0x56   :  { %84 = dma.hbm_to_vmem [thread:$0]  %s2192_s6, 6144, %s79_s29, [#allocation9], %s1884_s23, %s1884_s23, %s1885_s24  }
  0x57   :  { %1873 = dma.done.wait [#allocation3], 512  }
  0x58   :  { %1874 = vsyncadd [#allocation3], 4294966784 }
  0x59   :  { %1875 = dma.done.wait [#allocation6], 6272  }
  0x5a   :  { %1876 = vsyncadd [#allocation6], 4294961024 }
  0x5b   :  { %1877 = dma.done.wait [#allocation9], 7168  }
  0x5c   :  { %1878 = vsyncadd [#allocation9], 4294960128  ;;  %v1894_v0 = vmov 0.0   ;;  %vm1895_vm0 = vmmov 0   ;;  %v105_v1 = vld [vmem:[%s2186_s0] sm:$0xff]  ;;  %v106_v2 = vld [vmem:[%s2186_s0 + $0x8] sm:$0xff] }
  0x5d   :  { %1543 = vmatprep.subr.bf16.mxu0 %v1894_v0  ;;  %1545 = vmatprep.mubr.msk.bf16.mxu0 %vm1895_vm0, %v1894_v0  ;;  %v107_v3 = vadd.f32 %v106_v2, %v105_v1  ;;  %v1576_v4 = vld [vmem:[#allocation7 + $0x4] ss:$8 sps:$4 sm:$0xff]   ;;  %v1578_v5 = vld [vmem:[#allocation7] ss:$8 sps:$4 sm:$0xff]   ;;  %v1579_v7 = vld [vmem:[#allocation7 + $0x14] ss:$8 sps:$4 sm:$0xff]  }
  0x5e   :  { %497 = vmatprep.subr.bf16.mxu1 %v1576_v4  ;;  %v1581_v9 = vld [vmem:[#allocation7 + $0x10] ss:$8 sps:$4 sm:$0xff]   ;;  %v1582_v10 = vld [vmem:[#allocation7 + $0x24] ss:$8 sps:$4 sm:$0xff]   ;;  %v1584_v13 = vld [vmem:[#allocation7 + $0x20] ss:$8 sps:$4 sm:$0xff]  }
  0x5f   :  { %v108_v6 = vrot.slane %v107_v3, 4  ;;  %498 = vmatpush1.bf16.msra.mxu1 %v1578_v5  ;;  %v1585_v14 = vld [vmem:[#allocation7 + $0x34] ss:$8 sps:$4 sm:$0xff]   ;;  %v1587_v17 = vld [vmem:[#allocation7 + $0x30] ss:$8 sps:$4 sm:$0xff]   ;;  %vm147_vm3 = vcmask 130048   ;;  %v196_v5 = vlaneseq }
  0x60   :  { %499 = vmatprep.subr.bf16.mxu1 %v1579_v7  ;;  %v1588_v18 = vld [vmem:[#allocation7 + $0x44] ss:$8 sps:$4 sm:$0xff]   ;;  %v1590_v22 = vld [vmem:[#allocation7 + $0x40] ss:$8 sps:$4 sm:$0xff]   ;;  %v1591_v23 = vld [vmem:[#allocation7 + $0x54] ss:$8 sps:$4 sm:$0xff]  }
  0x61   :  { %v109_v8 = vadd.f32 %v108_v6, %v107_v3  ;;  %v1593_v26 = vld [vmem:[#allocation7 + $0x50] ss:$8 sps:$4 sm:$0xff]   ;;  %v1594_v27 = vld [vmem:[#allocation7 + $0x64] ss:$8 sps:$4 sm:$0xff]   ;;  %v1596_v30 = vld [vmem:[#allocation7 + $0x60] ss:$8 sps:$4 sm:$0xff]  }
  0x62   :  { %v1597_v31 = vld [vmem:[#allocation7 + $0x74] ss:$8 sps:$4 sm:$0xff]   ;;  %v1599_v34 = vld [vmem:[#allocation7 + $0x70] ss:$8 sps:$4 sm:$0xff]   ;;  %v1600_v35 = vld [vmem:[#allocation7 + $0x84] ss:$8 sps:$4 sm:$0xff]  }
  0x63   :  { %v110_v11 = vrot.slane %v109_v8, 2  ;;  %500 = vmatpush1.bf16.msra.mxu1 %v1581_v9  ;;  %v1602_v38 = vld [vmem:[#allocation7 + $0x80] ss:$8 sps:$4 sm:$0xff]   ;;  %v1603_v39 = vld [vmem:[#allocation7 + $0x94] ss:$8 sps:$4 sm:$0xff]   ;;  %v1896_v4 = vmov 0  }
  0x64   :  { %501 = vmatprep.subr.bf16.mxu1 %v1582_v10  ;;  %v1605_v42 = vld [vmem:[#allocation7 + $0x90] ss:$8 sps:$4 sm:$0xff]   ;;  %v1606_v43 = vld [vmem:[#allocation7 + $0xa4] ss:$8 sps:$4 sm:$0xff]   ;;  %v1608_v46 = vld [vmem:[#allocation7 + $0xa0] ss:$8 sps:$4 sm:$0xff]  }
  0x65   :  { %v111_v12 = vadd.f32 %v110_v11, %v109_v8  ;;  %v1609_v47 = vld [vmem:[#allocation7 + $0xb4] ss:$8 sps:$4 sm:$0xff]   ;;  %v1611_v48 = vld [vmem:[#allocation7 + $0xb0] ss:$8 sps:$4 sm:$0xff]   ;;  %v1612_v49 = vld [vmem:[#allocation7 + $0xc4] ss:$8 sps:$4 sm:$0xff]  }
  0x66   :  { %v1614_v50 = vld [vmem:[#allocation7 + $0xc0] ss:$8 sps:$4 sm:$0xff]   ;;  %v1615_v51 = vld [vmem:[#allocation7 + $0xd4] ss:$8 sps:$4 sm:$0xff]   ;;  %v1617_v54 = vld [vmem:[#allocation7 + $0xd0] ss:$8 sps:$4 sm:$0xff]  }
  0x67   :  { %v112_v15 = vrot.slane %v111_v12, 1  ;;  %502 = vmatpush1.bf16.msra.mxu1 %v1584_v13  ;;  %v1575_v61 = vld [vmem:[#allocation5] sm:$0xff]   ;;  %v1618_v62 = vld [vmem:[#allocation7 + $0xe4] ss:$8 sps:$4 sm:$0xff]   ;;  %v1620_v63 = vld [vmem:[#allocation7 + $0xe0] ss:$8 sps:$4 sm:$0xff]  }
  0x68   :  { %503 = vmatprep.subr.bf16.mxu1 %v1585_v14  ;;  %v1626_v3 = vld [vmem:[#allocation7 + $0x104] ss:$8 sps:$4 sm:$0xff]   ;;  %v2054_v7 = vshrl.u32 %v196_v5, 7  ;;  %s1897_s26 = smov [#allocation12]  }
  0x69   :  { %v113_v16 = vadd.f32 %v112_v15, %v111_v12  ;;  %s1353_s14 = sshll.u32 %s1897_s26, 4  ;;  %s1354_s14 = int_to_ptr.vmem [resolvable:$true] %s1353_s14 }
  0x6a   :  { %vm198_vm4 = vcmp.lt.s32.totalorder %v2054_v7, 1  ;;  %vm203_vm5 = vcmp.lt.s32.totalorder %v2054_v7, 7  ;;  %v1674_v7 = vld [vmem:[#allocation10 + $0xe0] sm:$0xff]   ;;  %s1829_s19 = scalar_lea.vmem %s1354_s14, 128  ;;  %p1834_p13 = scmp.lt.s32.totalorder %s1354_s14, %s1354_s14 }
  0x6b   :  { %v2032_v19 = vmul.f32 0.0625, %v113_v16  ;;  %504 = vmatpush1.bf16.msra.mxu1 %v1587_v17  ;;  %p1830_p12 = scmp.ne.s32.totalorder %s1354_s14, %s1829_s19  ;;  %p1835_p0 = scmp.lt.s32.totalorder %s1829_s19, %s1829_s19 }
  0x6c   :  { %505 = vmatprep.subr.bf16.mxu1 %v1588_v18  ;;  %v1624_v18 = vld [vmem:[#allocation7 + $0x100] ss:$8 sps:$4 sm:$0xff]  }
  0x6d   :  { %v2035_v20 = vsub.f32 %v105_v1, %v2032_v19  ;;  %v2038_v21 = vsub.f32 %v106_v2, %v2032_v19  ;;  %v1621_v1 = vld [vmem:[#allocation7 + $0xf4] ss:$8 sps:$4 sm:$0xff]   ;;  %v1623_v2 = vld [vmem:[#allocation7 + $0xf0] ss:$8 sps:$4 sm:$0xff]   ;;  %p1836_p1 = por %p1835_p0, %p1834_p13 }
  0x6f   :  { %v118_v24 = vmul.f32 %v2035_v20, %v2035_v20  ;;  %v119_v25 = vmul.f32 %v2038_v21, %v2038_v21  ;;  %506 = vmatpush1.bf16.msra.mxu1 %v1590_v22  ;;  %p1837_p2 = pnand %p1836_p1, %p1830_p12 }
  0x70   :  { %507 = vmatprep.subr.bf16.mxu1 %v1591_v23 }
  0x71   :  { %v120_v28 = vadd.f32 %v119_v25, %v118_v24  ;;  %v1629_v25 = vld [vmem:[#allocation7 + $0x114] ss:$8 sps:$4 sm:$0xff]  }
  0x73   :  { %v121_v29 = vrot.slane %v120_v28, 4  ;;  %508 = vmatpush1.bf16.msra.mxu1 %v1593_v26 }
  0x74   :  { %509 = vmatprep.subr.bf16.mxu1 %v1594_v27  ;;  %v1627_v27 = vld [vmem:[#allocation7 + $0x110] ss:$8 sps:$4 sm:$0xff]  }
  0x75   :  { %v122_v32 = vadd.f32 %v121_v29, %v120_v28  ;;  %v1632_v28 = vld [vmem:[#allocation7 + $0x124] ss:$8 sps:$4 sm:$0xff]   ;;  %v1630_v29 = vld [vmem:[#allocation7 + $0x120] ss:$8 sps:$4 sm:$0xff]  }
  0x77   :  { %v123_v33 = vrot.slane %v122_v32, 2  ;;  %510 = vmatpush1.bf16.msra.mxu1 %v1596_v30  ;;  %v1635_v30 = vld [vmem:[#allocation7 + $0x134] ss:$8 sps:$4 sm:$0xff]  }
  0x78   :  { %511 = vmatprep.subr.bf16.mxu1 %v1597_v31  ;;  %v1633_v31 = vld [vmem:[#allocation7 + $0x130] ss:$8 sps:$4 sm:$0xff]  }
  0x79   :  { %v124_v36 = vadd.f32 %v123_v33, %v122_v32  ;;  %v1638_v32 = vld [vmem:[#allocation7 + $0x144] ss:$8 sps:$4 sm:$0xff]   ;;  %v1636_v33 = vld [vmem:[#allocation7 + $0x140] ss:$8 sps:$4 sm:$0xff]  }
  0x7b   :  { %v125_v37 = vrot.slane %v124_v36, 1  ;;  %512 = vmatpush1.bf16.msra.mxu1 %v1599_v34  ;;  %v1641_v34 = vld [vmem:[#allocation7 + $0x154] ss:$8 sps:$4 sm:$0xff]  }
  0x7c   :  { %513 = vmatprep.subr.bf16.mxu1 %v1600_v35  ;;  %v1639_v35 = vld [vmem:[#allocation7 + $0x150] ss:$8 sps:$4 sm:$0xff]  }
  0x7d   :  { %v126_v40 = vadd.f32 %v125_v37, %v124_v36  ;;  %v1644_v36 = vld [vmem:[#allocation7 + $0x164] ss:$8 sps:$4 sm:$0xff]   ;;  %v1642_v37 = vld [vmem:[#allocation7 + $0x160] ss:$8 sps:$4 sm:$0xff]  }
  0x7f   :  { %v127_v41 = vmul.f32 0.0625, %v126_v40  ;;  %514 = vmatpush1.bf16.msra.mxu1 %v1602_v38  ;;  %v1647_v38 = vld [vmem:[#allocation7 + $0x174] ss:$8 sps:$4 sm:$0xff]  }
  0x80   :  { %515 = vmatprep.subr.bf16.mxu1 %v1603_v39  ;;  %v1645_v39 = vld [vmem:[#allocation7 + $0x170] ss:$8 sps:$4 sm:$0xff]  }
  0x81   :  { %v128_v44 = vadd.f32 1e-05, %v127_v41 }
  0x83   :  { %1699 = vrsqrt.f32 %v128_v44  ;;  %v134_v45 = vand.u32 2147483648, %v128_v44  ;;  %vm131_vm1 = vcmp.eq.f32.partialorder %v128_v44, inf  ;;  %516 = vmatpush1.bf16.msra.mxu1 %v1605_v42  ;;  %vm133_vm2 = vcmp.eq.f32.partialorder %v128_v44, 0.0 }
  0x84   :  { %517 = vmatprep.subr.bf16.mxu1 %v1606_v43 }
  0x87   :  { %518 = vmatpush1.bf16.msra.mxu1 %v1608_v46  ;;  %v1648_v46 = vld [vmem:[%s2190_s4] sm:$0xff]  }
  0x88   :  { %519 = vmatprep.subr.bf16.mxu1 %v1609_v47  ;;  %v1649_v47 = vld [vmem:[%s2190_s4 + $0x8] sm:$0xff]  }
  0x8b   :  { %520 = vmatpush1.bf16.msra.mxu1 %v1611_v48  ;;  %v1650_v48 = vld [vmem:[#allocation10 + $0x40] sm:$0xff]  }
  0x8c   :  { %521 = vmatprep.subr.bf16.mxu1 %v1612_v49  ;;  %v1651_v49 = vld [vmem:[#allocation10] sm:$0xff]  }
  0x8d   :  { %v1700_v52 = vpop.eup %1699 }
  0x8e   :  { %v130_v53 = vmul.f32 %v1700_v52, %v128_v44  ;;  %v1654_v52 = vld [vmem:[#allocation10 + $0x50] sm:$0xff]  }
  0x8f   :  { %522 = vmatpush1.bf16.msra.mxu1 %v1614_v50  ;;  %v1652_v50 = vld [vmem:[#allocation10 + $0x48] sm:$0xff]  }
  0x90   :  { %v132_v55 = vsel %vm131_vm1, %v128_v44, %v130_v53  ;;  %523 = vmatprep.subr.bf16.mxu1 %v1615_v51  ;;  %v1653_v51 = vld [vmem:[#allocation10 + $0x8] sm:$0xff]   ;;  %v1655_v53 = vld [vmem:[#allocation10 + $0x10] sm:$0xff]  }
  0x91   :  { %v2044_v56 = vsel %vm133_vm2, %v134_v45, %v132_v55  ;;  %v1657_v55 = vld [vmem:[#allocation10 + $0x18] sm:$0xff]  }
  0x92   :  { %1701 = vrcp.f32 %v2044_v56 }
  0x93   :  { %524 = vmatpush1.bf16.msra.mxu1 %v1617_v54  ;;  %v1656_v54 = vld [vmem:[#allocation10 + $0x58] sm:$0xff]  }
  0x94   :  { %525 = vmatprep.subr.bf16.mxu1 %v1618_v62  ;;  %v1663_v62 = vld [vmem:[#allocation10 + $0x30] sm:$0xff]  }
  0x97   :  { %526 = vmatpush1.bf16.msra.mxu1 %v1620_v63  ;;  %v1664_v63 = vld [vmem:[#allocation10 + $0x78] sm:$0xff]  }
  0x98   :  { %527 = vmatprep.subr.bf16.mxu1 %v1621_v1  ;;  %v1665_v1 = vld [vmem:[#allocation10 + $0x38] sm:$0xff]  }
  0x9b   :  { %528 = vmatpush1.bf16.msra.mxu1 %v1623_v2  ;;  %v1666_v2 = vld [vmem:[#allocation10 + $0xc0] sm:$0xff]  }
  0x9c   :  { %v1702_v57 = vpop.eup %1701  ;;  %540 = vmatprep.subr.bf16.mxu1 %v1626_v3 }
  0x9d   :  { %v137_v58 = vmul.f32 %v1702_v57, %v2035_v20  ;;  %v138_v59 = vmul.f32 %v1702_v57, %v2038_v21  ;;  %v1658_v57 = vld [vmem:[#allocation10 + $0x60] sm:$0xff]  }
  0x9f   :  { %v141_v60 = vpack.c.bf16 %v138_v59, %v137_v58 }
  0xa1   :  { %1544 = vmatpush3.bf16.msra.mxu0 %v141_v60  ;;  %v1661_v60 = vld [vmem:[#allocation10 + $0x28] sm:$0xff]  }
  0xa4   :  { %1546 = vmatmul.mubr.msk.bf16.vlgmr.msra.gmra.mrb[0].mxu0 %vm147_vm3, %v1575_v61  ;;  %v1662_v61 = vld [vmem:[#allocation10 + $0x70] sm:$0xff]  }
  0xa5   :  { %645 = vmatprep.mubr.bf16.mxu0 %v1896_v4 }
 0x177   :  { %v2051_v6 = vpop.f32.mrb[0].mxu0 }
 0x178   :  { %v192_v8 = vsub.f32 %v137_v58, %v2051_v6  ;;  %v1547_v9 = vpop.f32.mrb[1].mxu0  ;;  %v1659_v58 = vld [vmem:[#allocation10 + $0x20] sm:$0xff]  }
 0x179   :  { %v2057_v10 = vpop.f32.mrb[2].mxu0 }
 0x17a   :  { %v193_v11 = vsub.f32 %v138_v59, %v2057_v10  ;;  %v1548_v12 = vpop.f32.mrb[3].mxu0  ;;  %v194_v13 = vrot.slane %v192_v8, 7  ;;  %v201_v14 = vrot.slane %v192_v8, 1  ;;  %v1660_v59 = vld [vmem:[#allocation10 + $0x68] sm:$0xff]  }
 0x17b   :  { %v591_v12 = vld [vmem:[#allocation8 + $0x10] sm:$0xff] }
 0x17c   :  { %v195_v15 = vrot.slane %v193_v11, 7  ;;  %v202_v16 = vrot.slane %v193_v11, 1  ;;  %v207_v17 = vpack.c.bf16 %v193_v11, %v192_v8  ;;  %v589_v8 = vld [vmem:[#allocation8] sm:$0xff]  ;;  %v590_v11 = vld [vmem:[#allocation8 + $0x8] sm:$0xff] }
 0x17e   :  { %529 = vmatprep.mubr.bf16.mxu1 %v207_v17  ;;  %v199_v20 = vsel %vm198_vm4, %v194_v13, %v195_v15  ;;  %v200_v21 = vsel %vm198_vm4, %v195_v15, %v194_v13  ;;  %v204_v22 = vsel %vm203_vm5, %v201_v14, %v202_v16  ;;  %v205_v23 = vsel %vm203_vm5, %v202_v16, %v201_v14  ;;  %v592_v13 = vld [vmem:[#allocation8 + $0x18] sm:$0xff] }
 0x17f   :  { %v206_v24 = vpack.c.bf16 %v199_v20, %v200_v21  ;;  %v208_v26 = vpack.c.bf16 %v205_v23, %v204_v22  ;;  %v593_v20 = vld [vmem:[#allocation8 + $0x20] sm:$0xff]  ;;  %v594_v21 = vld [vmem:[#allocation8 + $0x28] sm:$0xff]  ;;  %v595_v23 = vld [vmem:[#allocation8 + $0x30] sm:$0xff] }
 0x181   :  { %530 = vmatmul.mubr.bf16.vlgmr.msra.gmra.mrb[0].mxu1 %v206_v24 }
 0x182   :  { %541 = vmatpush1.bf16.msra.mxu1 %v1624_v18  ;;  %572 = vmatprep.mubr.bf16.mxu1 %v1896_v4 }
 0x183   :  { %542 = vmatprep.subr.bf16.mxu1 %v1629_v25 }
 0x186   :  { %543 = vmatpush1.bf16.msra.mxu1 %v1627_v27  ;;  %v596_v27 = vld [vmem:[#allocation8 + $0x38] sm:$0xff] }
 0x187   :  { %544 = vmatprep.subr.bf16.mxu1 %v1632_v28  ;;  %v691_v28 = vand.u32 127, %v196_v5 }
 0x189   :  { %vm697_vm6 = vcmp.lt.s32.totalorder %v691_v28, 16 }
 0x18a   :  { %545 = vmatpush1.bf16.msra.mxu1 %v1630_v29 }
 0x18b   :  { %546 = vmatprep.subr.bf16.mxu1 %v1635_v30 }
 0x18e   :  { %547 = vmatpush1.bf16.msra.mxu1 %v1633_v31 }
 0x18f   :  { %548 = vmatprep.subr.bf16.mxu1 %v1638_v32 }
 0x192   :  { %549 = vmatpush1.bf16.msra.mxu1 %v1636_v33 }
 0x193   :  { %550 = vmatprep.subr.bf16.mxu1 %v1641_v34 }
 0x196   :  { %551 = vmatpush1.bf16.msra.mxu1 %v1639_v35 }
 0x197   :  { %552 = vmatprep.subr.bf16.mxu1 %v1644_v36 }
 0x19a   :  { %553 = vmatpush1.bf16.msra.mxu1 %v1642_v37 }
 0x19b   :  { %554 = vmatprep.subr.bf16.mxu1 %v1647_v38 }
 0x19e   :  { %555 = vmatpush1.bf16.msra.mxu1 %v1645_v39 }
 0x19f   :  { %1549 = vmatprep.subr.bf16.mxu1 %v1894_v0 }
 0x1a1   :  { %573 = vmatmul.mubr.bf16.vlgmr.msra.gmra.mrb[0].mxu1 %v208_v26 }
 0x1a2   :  { %1551 = vmatprep.mubr.msk.bf16.mxu1 %vm1895_vm0, %v1894_v0 }
 0x274   :  { %v574_v40 = vpop.f32.mrb[0].mxu1 }
 0x275   :  { %v576_v41 = vpop.f32.mrb[1].mxu1 }
 0x276   :  { %v578_v42 = vpop.f32.mrb[2].mxu1 }
 0x277   :  { %v587_v43 = vpack.c.bf16 %v578_v42, %v574_v40  ;;  %v580_v44 = vpop.f32.mrb[3].mxu1 }
 0x278   :  { %v588_v45 = vpack.c.bf16 %v580_v44, %v576_v41 }
 0x27a   :  { %613 = vmatprep.subr.bf16.mxu0 %v588_v45 }
 0x27b   :  { %614 = vmatpush1.bf16.msra.mxu0 %v587_v43 }
 0x27c   :  { %1475 = vmatprep.subr.bf16.mxu0 %v1650_v48 }
 0x27e   :  { %1420 = vmatmul.mubr.msk.bf16.vlgmr.msra.gmra.mrb[4].mxu0 %vm147_vm3, %v1648_v46 }
 0x27f   :  { %655 = vmatprep.mubr.bf16.mxu0 %v1896_v4  ;;  %1476 = vmatpush3.bf16.msra.mxu0 %v1651_v49 }
 0x280   :  { %1477 = vmatprep.subr.bf16.mxu0 %v1652_v50 }
 0x283   :  { %1478 = vmatpush3.bf16.msra.mxu0 %v1653_v51 }
 0x284   :  { %1479 = vmatprep.subr.bf16.mxu0 %v1654_v52 }
 0x286   :  { %1421 = vmatmul.mubr.msk.bf16.gmra.mrb[8].mxu0 %vm147_vm3, %v1649_v47 }
 0x287   :  { %1480 = vmatpush3.bf16.msra.mxu0 %v1655_v53 }
 0x288   :  { %1481 = vmatprep.subr.bf16.mxu0 %v1656_v54 }
 0x28b   :  { %1482 = vmatpush3.bf16.msra.mxu0 %v1657_v55 }
 0x28c   :  { %1483 = vmatprep.subr.bf16.mxu0 %v1658_v57 }
 0x28f   :  { %1484 = vmatpush3.bf16.msra.mxu0 %v1659_v58  ;;  %v666_v58 = vld [vmem:[#allocation2] sm:$0xff] }
 0x290   :  { %1485 = vmatprep.subr.bf16.mxu0 %v1660_v59  ;;  %v1422_v59 = vsel %vm697_vm6, 1.0, %v1894_v0 }
 0x293   :  { %1486 = vmatpush3.bf16.msra.mxu0 %v1661_v60 }
 0x294   :  { %1487 = vmatprep.subr.bf16.mxu0 %v1662_v61 }
 0x297   :  { %1488 = vmatpush3.bf16.msra.mxu0 %v1663_v62  ;;  %v667_v62 = vld [vmem:[#allocation2 + $0x8] sm:$0xff] }
 0x298   :  { %1489 = vmatprep.subr.bf16.mxu0 %v1664_v63 }
 0x29b   :  { %1490 = vmatpush3.bf16.msra.mxu0 %v1665_v1  ;;  %v668_v1 = vld [vmem:[#allocation2 + $0x10] sm:$0xff] }
 0x29c   :  { %1497 = vmatprep.subr.bf16.mxu0 %v1666_v2 }
 0x351   :  { %v647_v3 = vpop.f32.mrb[4].mxu0 }
 0x352   :  { %v649_v4 = vpop.f32.mrb[5].mxu0  ;;  %v2083_v15 = vadd.f32 %v647_v3, %v589_v8 }
 0x353   :  { %v651_v9 = vpop.f32.mrb[6].mxu0  ;;  %v2085_v16 = vadd.f32 %v649_v4, %v590_v11 }
 0x354   :  { %v653_v14 = vpop.f32.mrb[7].mxu0  ;;  %v2087_v17 = vadd.f32 %v651_v9, %v591_v12  ;;  %v707_v24 = vmul.f32 %v2083_v15, %v2083_v15  ;;  %v669_v12 = vld [vmem:[#allocation2 + $0x18] sm:$0xff] }
 0x355   :  { %v2089_v18 = vadd.f32 %v653_v14, %v592_v13  ;;  %v708_v29 = vmul.f32 %v2085_v16, %v2085_v16 }
 0x356   :  { %v709_v30 = vmul.f32 %v2087_v17, %v2087_v17 }
 0x357   :  { %v2100_v31 = vmul.f32 %v2089_v18, %v2089_v18 }
 0x359   :  { %v657_v22 = vpop.f32.mrb[8].mxu0 }
 0x35a   :  { %v658_v25 = vadd.f32 %v657_v22, %v593_v20  ;;  %v659_v26 = vpop.f32.mrb[9].mxu0 }
 0x35b   :  { %v660_v32 = vadd.f32 %v659_v26, %v594_v21  ;;  %v661_v33 = vpop.f32.mrb[10].mxu0 }
 0x35c   :  { %v670_v34 = vmul.f32 0.5, %v658_v25  ;;  %v703_v35 = vadd.f32 1.0, %v658_v25  ;;  %v715_v36 = vmul.f32 1.442695, %v658_v25  ;;  %v662_v37 = vadd.f32 %v661_v33, %v595_v23  ;;  %v663_v38 = vpop.f32.mrb[11].mxu0 }
 0x35d   :  { %v671_v39 = vmul.f32 0.5, %v660_v32  ;;  %v704_v40 = vadd.f32 1.0, %v660_v32  ;;  %v717_v5 = vmul.f32 1.442695, %v660_v32  ;;  %v664_v41 = vadd.f32 %v663_v38, %v596_v27 }
 0x35e   :  { %v674_v42 = vmul.f32 1.442695, %v670_v34  ;;  %1703 = vpow2.f32 %v715_v36  ;;  %v672_v43 = vmul.f32 0.5, %v662_v37  ;;  %v705_v44 = vadd.f32 1.0, %v662_v37 }
 0x35f   :  { %v676_v45 = vmul.f32 1.442695, %v671_v39  ;;  %1705 = vpow2.f32 %v717_v5  ;;  %v719_v46 = vmul.f32 1.442695, %v662_v37  ;;  %v673_v47 = vmul.f32 0.5, %v664_v41 }
 0x360   :  { %1707 = vpow2.f32 %v674_v42  ;;  %v678_v48 = vmul.f32 1.442695, %v672_v43  ;;  %v713_v49 = vsub.f32 %v705_v44, %v709_v30  ;;  %v706_v50 = vadd.f32 1.0, %v664_v41 }
 0x361   :  { %1709 = vpow2.f32 %v676_v45  ;;  %v680_v51 = vmul.f32 1.442695, %v673_v47  ;;  %v721_v52 = vmul.f32 1.442695, %v664_v41  ;;  %v711_v53 = vsub.f32 %v703_v35, %v707_v24 }
 0x362   :  { %1711 = vpow2.f32 %v678_v48  ;;  %v712_v54 = vsub.f32 %v704_v40, %v708_v29  ;;  %v714_v55 = vsub.f32 %v706_v50, %v2100_v31  ;;  %v1668_v50 = vld [vmem:[#allocation10 + $0xc8] sm:$0xff]  }
 0x363   :  { %1713 = vpow2.f32 %v719_v46  ;;  %v1667_v46 = vld [vmem:[#allocation10 + $0x80] sm:$0xff]  }
 0x364   :  { %1715 = vpow2.f32 %v680_v51 }
 0x365   :  { %1717 = vpow2.f32 %v721_v52  ;;  %v1669_v52 = vld [vmem:[#allocation10 + $0x88] sm:$0xff]  }
 0x368   :  { %v1704_v57 = vpop.eup %1703 }
 0x369   :  { %v1706_v60 = vpop.eup %1705  ;;  %v723_v61 = vsub.f32 %v711_v53, %v1704_v57  ;;  %v1670_v53 = vld [vmem:[#allocation10 + $0xd0] sm:$0xff]   ;;  %v1673_v57 = vld [vmem:[#allocation10 + $0x98] sm:$0xff]  }
 0x36a   :  { %v1708_v63 = vpop.eup %1707  ;;  %v724_v2 = vsub.f32 %v712_v54, %v1706_v60  ;;  %v1671_v54 = vld [vmem:[#allocation10 + $0x90] sm:$0xff]   ;;  %v1677_v60 = vld [vmem:[#allocation10 + $0xa8] sm:$0xff]  }
 0x36b   :  { %v1710_v3 = vpop.eup %1709  ;;  %v682_v4 = vmul.f32 %v1708_v63, %v666_v58  ;;  %v727_v8 = vmul.f32 %v1422_v59, %v723_v61  ;;  %v1675_v58 = vld [vmem:[#allocation10 + $0xa0] sm:$0xff]   ;;  %v1678_v61 = vld [vmem:[#allocation10 + $0xf0] sm:$0xff]   ;;  %v1680_v63 = vld [vmem:[#allocation10 + $0xf8] sm:$0xff]  }
 0x36c   :  { %v1712_v9 = vpop.eup %1711  ;;  %v728_v11 = vmul.f32 0.0, %v724_v2  ;;  %v683_v13 = vmul.f32 %v1710_v3, %v667_v62  ;;  %v1679_v62 = vld [vmem:[#allocation10 + $0xb0] sm:$0xff]   ;;  %v1682_v2 = vld [vmem:[#allocation10 + $0x140] sm:$0xff]  }
 0x36d   :  { %v1714_v14 = vpop.eup %1713  ;;  %v2105_v20 = vadd.f32 %v682_v4, %v2083_v15  ;;  %v684_v21 = vmul.f32 %v1712_v9, %v668_v1  ;;  %v1681_v1 = vld [vmem:[#allocation10 + $0xb8] sm:$0xff]   ;;  %v1683_v3 = vld [vmem:[#allocation10 + $0x100] sm:$0xff]   ;;  %v1684_v4 = vld [vmem:[#allocation10 + $0x148] sm:$0xff]  }
 0x36e   :  { %v1716_v22 = vpop.eup %1715  ;;  %v731_v0 = vadd.f32 %v728_v11, %v727_v8  ;;  %v725_v23 = vsub.f32 %v713_v49, %v1714_v14  ;;  %v687_v24 = vadd.f32 %v683_v13, %v2085_v16  ;;  %v1685_v8 = vld [vmem:[#allocation10 + $0x108] sm:$0xff]   ;;  %v1686_v9 = vld [vmem:[#allocation10 + $0x150] sm:$0xff]   ;;  %v1689_v13 = vld [vmem:[#allocation10 + $0x118] sm:$0xff]  }
 0x36f   :  { %v1718_v25 = vpop.eup %1717  ;;  %v2109_v26 = vadd.f32 %v684_v21, %v2087_v17  ;;  %v685_v27 = vmul.f32 %v1716_v22, %v669_v12  ;;  %v745_v30 = vrot.slane %v2105_v20, 7  ;;  %v753_v17 = vrot.slane %v2105_v20, 1  ;;  %v1687_v11 = vld [vmem:[#allocation10 + $0x110] sm:$0xff]   ;;  %v1688_v12 = vld [vmem:[#allocation10 + $0x158] sm:$0xff]   ;;  %v1690_v14 = vld [vmem:[#allocation10 + $0x160] sm:$0xff]  }
 0x370   :  { %732 = vadd.xlane.f32.xlu0 %v731_v0  ;;  %v726_v28 = vsub.f32 %v714_v55, %v1718_v25  ;;  %v729_v29 = vmul.f32 %v1422_v59, %v725_v23  ;;  %v746_v34 = vrot.slane %v687_v24, 7  ;;  %v754_v35 = vrot.slane %v687_v24, 1  ;;  %v1672_v55 = vld [vmem:[#allocation10 + $0xd8] sm:$0xff]   ;;  %v1676_v59 = vld [vmem:[#allocation10 + $0xe8] sm:$0xff]   ;;  %v1694_v0 = vld [vmem:[#allocation10 + $0x170] sm:$0xff]  }
 0x371   :  { %v689_v31 = vadd.f32 %v685_v27, %v2089_v18  ;;  %v747_v15 = vrot.slane %v2109_v26, 7  ;;  %v763_v32 = vpack.c.bf16 %v2109_v26, %v2105_v20  ;;  %v755_v33 = vrot.slane %v2109_v26, 1  ;;  %v1691_v20 = vld [vmem:[#allocation10 + $0x120] sm:$0xff]   ;;  %v1692_v21 = vld [vmem:[#allocation10 + $0x168] sm:$0xff]   ;;  %v1695_v23 = vld [vmem:[#allocation10 + $0x130] sm:$0xff]  }
 0x372   :  { %v730_v16 = vmul.f32 0.0, %v726_v28  ;;  %v1693_v22 = vld [vmem:[#allocation10 + $0x128] sm:$0xff]   ;;  %v1697_v25 = vld [vmem:[#allocation10 + $0x138] sm:$0xff]  }
 0x373   :  { %v748_v36 = vrot.slane %v689_v31, 7  ;;  %v749_v37 = vsel %vm198_vm4, %v745_v30, %v747_v15  ;;  %v751_v38 = vsel %vm198_vm4, %v747_v15, %v745_v30  ;;  %v764_v18 = vpack.c.bf16 %v689_v31, %v687_v24  ;;  %v1696_v24 = vld [vmem:[#allocation10 + $0x178] sm:$0xff]  }
 0x374   :  { %v734_v39 = vadd.f32 %v730_v16, %v729_v29  ;;  %v761_v40 = vpack.c.bf16 %v749_v37, %v751_v38  ;;  %v756_v5 = vrot.slane %v689_v31, 1  ;;  %v2124_v41 = vsel %vm203_vm5, %v753_v17, %v755_v33 }
 0x375   :  { %v750_v42 = vsel %vm198_vm4, %v746_v34, %v748_v36  ;;  %v752_v43 = vsel %vm198_vm4, %v748_v36, %v746_v34  ;;  %v2132_v44 = vsel %vm203_vm5, %v755_v33, %v753_v17 }
 0x376   :  { %735 = vadd.xlane.f32.xlu0 %v734_v39  ;;  %v762_v45 = vpack.c.bf16 %v750_v42, %v752_v43  ;;  %v758_v47 = vsel %vm203_vm5, %v754_v35, %v756_v5  ;;  %v760_v48 = vsel %vm203_vm5, %v756_v5, %v754_v35  ;;  %v765_v49 = vpack.c.bf16 %v2132_v44, %v2124_v41 }
 0x377   :  { %v766_v51 = vpack.c.bf16 %v760_v48, %v758_v47 }
 0x378   :  { %1185 = vmatprep.mubr.bf16.mxu0 %v762_v45 }
 0x379   :  { %1186 = vmatmul.mubr.bf16.vlgmr.msra.gmra.mrb[12].mxu0 %v761_v40 }
 0x37a   :  { %1498 = vmatpush3.bf16.msra.mxu0 %v1667_v46  ;;  %1226 = vmatprep.mubr.bf16.mxu0 %v764_v18 }
 0x37b   :  { %1499 = vmatprep.subr.bf16.mxu0 %v1668_v50 }
 0x37e   :  { %1500 = vmatpush3.bf16.msra.mxu0 %v1669_v52 }
 0x37f   :  { %1501 = vmatprep.subr.bf16.mxu0 %v1670_v53 }
 0x382   :  { %1502 = vmatpush3.bf16.msra.mxu0 %v1671_v54 }
 0x383   :  { %1503 = vmatprep.subr.bf16.mxu0 %v1672_v55 }
 0x386   :  { %1504 = vmatpush3.bf16.msra.mxu0 %v1673_v57 }
 0x387   :  { %1505 = vmatprep.subr.bf16.mxu0 %v1674_v7 }
 0x38a   :  { %1506 = vmatpush3.bf16.msra.mxu0 %v1675_v58 }
 0x38b   :  { %1507 = vmatprep.subr.bf16.mxu0 %v1676_v59 }
 0x38e   :  { %1508 = vmatpush3.bf16.msra.mxu0 %v1677_v60 }
 0x38f   :  { %1509 = vmatprep.subr.bf16.mxu0 %v1678_v61 }
 0x392   :  { %1510 = vmatpush3.bf16.msra.mxu0 %v1679_v62 }
 0x393   :  { %1511 = vmatprep.subr.bf16.mxu0 %v1680_v63 }
 0x396   :  { %1512 = vmatpush3.bf16.msra.mxu0 %v1681_v1 }
 0x397   :  { %1519 = vmatprep.subr.bf16.mxu0 %v1682_v2 }
 0x399   :  { %1227 = vmatmul.mubr.bf16.vlgmr.msra.gmra.mrb[16].mxu0 %v763_v32 }
 0x39a   :  { %1520 = vmatpush3.bf16.msra.mxu0 %v1683_v3  ;;  %1267 = vmatprep.mubr.bf16.mxu0 %v766_v51 }
 0x39b   :  { %1521 = vmatprep.subr.bf16.mxu0 %v1684_v4 }
 0x39e   :  { %1522 = vmatpush3.bf16.msra.mxu0 %v1685_v8 }
 0x39f   :  { %1523 = vmatprep.subr.bf16.mxu0 %v1686_v9 }
 0x3a2   :  { %1524 = vmatpush3.bf16.msra.mxu0 %v1687_v11 }
 0x3a3   :  { %1525 = vmatprep.subr.bf16.mxu0 %v1688_v12 }
 0x3a6   :  { %1526 = vmatpush3.bf16.msra.mxu0 %v1689_v13 }
 0x3a7   :  { %1527 = vmatprep.subr.bf16.mxu0 %v1690_v14 }
 0x3aa   :  { %1528 = vmatpush3.bf16.msra.mxu0 %v1691_v20 }
 0x3ab   :  { %1529 = vmatprep.subr.bf16.mxu0 %v1692_v21 }
 0x3ae   :  { %1530 = vmatpush3.bf16.msra.mxu0 %v1693_v22 }
 0x3af   :  { %1531 = vmatprep.subr.bf16.mxu0 %v1694_v0 }
 0x3b2   :  { %1532 = vmatpush3.bf16.msra.mxu0 %v1695_v23 }
 0x3b3   :  { %1533 = vmatprep.subr.bf16.mxu0 %v1696_v24 }
 0x3b6   :  { %1534 = vmatpush3.bf16.msra.mxu0 %v1697_v25 }
 0x3b9   :  { %1268 = vmatmul.mubr.bf16.vlgmr.msra.gmra.mrb[20].mxu0 %v765_v49 }
 0x3fd   :  { %v733_v26 = vpop.xlane.xlu0 %732 }
 0x403   :  { %v736_v27 = vpop.xlane.xlu0 %735 }
 0x404   :  { %v737_v28 = vadd.f32 %v736_v27, %v733_v26 }
 0x406   :  { %v738_v29 = vrot.slane %v737_v28, 4 }
 0x408   :  { %v739_v30 = vadd.f32 %v738_v29, %v737_v28 }
 0x40a   :  { %v740_v31 = vrot.slane %v739_v30, 2 }
 0x40c   :  { %v741_v15 = vadd.f32 %v740_v31, %v739_v30 }
 0x40e   :  { %v742_v32 = vrot.slane %v741_v15, 1 }
 0x410   :  { %v743_v33 = vadd.f32 %v742_v32, %v741_v15 }
 0x412   :  { %v744_v16 = vmul.f32 -0.5, %v743_v33 }
 0x414   :  { %1334 = vst [vmem:[#allocation12] sm:$0xff] %v744_v16 }
 0x44c   :  { %v1491_v34 = vpop.f32.mrb[12].mxu0 }
 0x44d   :  { %v1492_v35 = vpop.f32.mrb[13].mxu0 }
 0x44e   :  { %v1493_v17 = vadd.f32 %v1492_v35, %v1491_v34  ;;  %v1494_v36 = vpop.f32.mrb[14].mxu0 }
 0x44f   :  { %v1495_v37 = vpop.f32.mrb[15].mxu0 }
 0x450   :  { %v1188_v38 = vadd.f32 %v1493_v17, %v2051_v6  ;;  %v1496_v18 = vadd.f32 %v1495_v37, %v1494_v36 }
 0x452   :  { %v1191_v39 = vadd.f32 %v1496_v18, %v2057_v10  ;;  %v1698_v10 = vld [vmem:[%s2193_s7] sm:$0xff]  }
 0x46c   :  { %v1513_v40 = vpop.f32.mrb[16].mxu0 }
 0x46d   :  { %v1514_v5 = vpop.f32.mrb[17].mxu0 }
 0x46e   :  { %v1515_v41 = vadd.f32 %v1514_v5, %v1513_v40  ;;  %v1516_v42 = vpop.f32.mrb[18].mxu0 }
 0x46f   :  { %v1517_v43 = vpop.f32.mrb[19].mxu0 }
 0x470   :  { %v1229_v44 = vadd.f32 %v1515_v41, %v1188_v38  ;;  %v1518_v45 = vadd.f32 %v1517_v43, %v1516_v42 }
 0x472   :  { %v1232_v46 = vadd.f32 %v1518_v45, %v1191_v39 }
 0x48c   :  { %v1535_v47 = vpop.f32.mrb[20].mxu0 }
 0x48d   :  { %v1536_v48 = vpop.f32.mrb[21].mxu0 }
 0x48e   :  { %v1537_v49 = vadd.f32 %v1536_v48, %v1535_v47  ;;  %v1538_v50 = vpop.f32.mrb[22].mxu0 }
 0x48f   :  { %v1539_v51 = vpop.f32.mrb[23].mxu0 }
 0x490   :  { %v1270_v52 = vadd.f32 %v1537_v49, %v1229_v44  ;;  %v1540_v53 = vadd.f32 %v1539_v51, %v1538_v50 }
 0x492   :  { %v1273_v54 = vadd.f32 %v1540_v53, %v1232_v46 }
 0x494   :  { %v1276_v6 = vpack.c.bf16 %v1273_v54, %v1270_v52 }
 0x496   :  { %1550 = vmatpush3.bf16.msra.mxu1 %v1276_v6 }
 0x499   :  { %1552 = vmatmul.mubr.msk.bf16.vlgmr.msra.gmra.mrb[4].mxu1 %vm147_vm3, %v1698_v10 }
 0x49a   :  { %1840 = shalt.err (!%p1837_p2)
}
 0x49b   :  { %s1841_s11 = scalar_lea.hbm %s2196_s10, 128 }
 0x49c   :  { %p1842_p3 = scmp.ne.s32.totalorder %s2196_s10, %s1841_s11  ;;  %p1845_p4 = scmp.lt.u32.totalorder %s1841_s11, %s2196_s10 }
 0x49e   :  { %p1847_p5 = pnand %p1845_p4, %p1842_p3 }
 0x4a0   :  { %1850 = shalt.err (!%p1847_p5)
}
 0x4a1   :  { %1356 = dma.vmem_to_hbm [thread:$0]  %s1354_s14, 128, %s2196_s10, [#allocation13]   ;;  %v1277_v55 = vld [vmem:[%s2194_s8] sm:$0xff]  ;;  %v1278_v7 = vld [vmem:[%s2194_s8 + $0x8] sm:$0xff] }
 0x4a2   :  { %s1898_s2 = smov [#allocation11]  }
 0x4a3   :  { %s1340_s20 = sshll.u32 %s1898_s2, 4  ;;  %s1341_s20 = int_to_ptr.vmem [resolvable:$true] %s1340_s20 }
 0x4a4   :  { %s1851_s10 = scalar_lea.vmem %s1341_s20, 256  ;;  %p1856_p7 = scmp.lt.s32.totalorder %s1341_s20, %s1341_s20 }
 0x4a5   :  { %p1852_p6 = scmp.ne.s32.totalorder %s1341_s20, %s1851_s10  ;;  %p1857_p8 = scmp.lt.s32.totalorder %s1851_s10, %s1851_s10 }
 0x4a7   :  { %p1858_p9 = por %p1857_p8, %p1856_p7 }
 0x4a9   :  { %p1859_p10 = pnand %p1858_p9, %p1852_p6 }
 0x56c   :  { %v1321_v57 = vpop.f32.mrb[4].mxu1 }
 0x56d   :  { %v1322_v58 = vadd.f32 %v1321_v57, %v1277_v55  ;;  %v1553_v59 = vpop.f32.mrb[5].mxu1 }
 0x56e   :  { %v1324_v60 = vpop.f32.mrb[6].mxu1 }
 0x56f   :  { %v1328_v61 = vmul.f32 %v1322_v58, %v2044_v56  ;;  %v1325_v62 = vadd.f32 %v1324_v60, %v1278_v7  ;;  %v1554_v63 = vpop.f32.mrb[7].mxu1 }
 0x571   :  { %v1330_v1 = vadd.f32 %v1328_v61, %v2032_v19  ;;  %v1329_v2 = vmul.f32 %v1325_v62, %v2044_v56 }
 0x573   :  { %1332 = vst [vmem:[#allocation11] sm:$0xff] %v1330_v1  ;;  %v1331_v3 = vadd.f32 %v1329_v2, %v2032_v19 }
 0x575   :  { %1333 = vst [vmem:[#allocation11 + $0x8] sm:$0xff] %v1331_v3 }
 0x576   :  { %1862 = shalt.err (!%p1859_p10)
}
 0x577   :  { %s1863_s22 = scalar_lea.hbm %s2195_s9, 256 }
 0x578   :  { %p1864_p11 = scmp.ne.s32.totalorder %s2195_s9, %s1863_s22  ;;  %p1867_p12 = scmp.lt.u32.totalorder %s1863_s22, %s2195_s9 }
 0x57a   :  { %p1869_p13 = pnand %p1867_p12, %p1864_p11 }
 0x57c   :  { %1872 = shalt.err (!%p1869_p13)
}
 0x57d   :  { %1346 = dma.vmem_to_hbm [thread:$0]  %s1341_s20, 256, %s2195_s9, [#allocation4], %s1891_s1, %s1891_s1, %s1892_s30  }
 0x57e   :  { %1879 = dma.done.wait [#allocation4], 256  }
 0x57f   :  { %1880 = vsyncadd [#allocation4], 4294967040 }
 0x580   :  { %1881 = dma.done.wait [#allocation13], 128  }
 0x581   :  { %1882 = vsyncadd [#allocation13], 4294967168 }
 0x582   :  { %1363 = vsyncpa [#allocation3], 1 }
 0x583   :  { %1364 = vsyncpa [#allocation6], 1 }
 0x584   :  { %1365 = vsyncpa [#allocation9], 1 }
 0x585   :  { %1366 = vsyncpa [#allocation4], 1 }
 0x586   :  { %1367 = vsyncpa [#allocation13], 1 }

</bundles_post_ra>
